<compile_context>
chip_gen: v7x
topology: tpu7x:2x2x1
jax: 0.10.0
libtpu: 0.0.40
codegen_flags: <defaults>
</compile_context>

<pallas_src>
import math

import jax
import jax.numpy as jnp
from jax.experimental import pallas as pl
from jax.experimental.pallas import tpu as pltpu

# ---- "config" (small, but consistent with a BERT-style layer) --------------
NUM_LAYERS = 2
HIDDEN = 32
NUM_HEADS = 4
HEAD_DIM = HIDDEN // NUM_HEADS
INTERMEDIATE = 64
LN_EPS = 1e-12


# ---------------------------- in-kernel helpers ------------------------------
def _layer_norm(x, gamma, beta):
    # One-pass LayerNorm: E[x^2] - E[x]^2 (halves cross-lane reductions).
    mean = jnp.mean(x, axis=-1, keepdims=True)
    meansq = jnp.mean(x * x, axis=-1, keepdims=True)
    var = jnp.maximum(meansq - mean * mean, 0.0)
    inv = jax.lax.rsqrt(var + LN_EPS)
    return (x - mean) * inv * gamma + beta


def _erf_approx(x):
    # Abramowitz & Stegun 7.1.26 rational approximation of erf
    # (max abs err ~1.5e-7).  Uses only exp/mul/where -> robust Mosaic lowering.
    a1, a2, a3, a4, a5 = 0.254829592, -0.284496736, 1.421413741, -1.453152027, 1.061405429
    p = 0.3275911
    ax = jnp.abs(x)
    t = 1.0 / (1.0 + p * ax)
    poly = ((((a5 * t + a4) * t + a3) * t + a2) * t + a1) * t
    y = 1.0 - poly * jnp.exp(-ax * ax)
    return jnp.where(x < 0.0, -y, y)


def _gelu(x):
    # Exact-erf BERT GELU (via high-accuracy erf approximation above).
    return 0.5 * x * (1.0 + _erf_approx(x * (1.0 / math.sqrt(2.0))))


# --------------------------- fused encoder kernel ----------------------------
def encoder_kernel(h_ref, mask_ref,
                   wqkv_ref, bqkv_ref, wo_ref, bo_ref, g1_ref, b1_ref,
                   wi_ref, bi_ref, wf_ref, bf_ref, g2_ref, b2_ref,
                   out_ref, h_scr):
    # Layer index = grid position.  Hidden states carried in VMEM scratch.
    @pl.when(pl.program_id(0) == 0)
    def _():
        h_scr[...] = h_ref[...].astype(jnp.float32)

    x = h_scr[...]                        # (B*S, H) f32, VMEM-resident
    mask = mask_ref[...]                  # (B, 1, S) additive mask

    B = mask.shape[0]
    S = mask.shape[2]
    BS, H = x.shape
    HD = H // NUM_HEADS

    # --- fused QKV projection: single MXU matmul (scale folded into Wq/bq) ---
    qkv = jnp.dot(x, wqkv_ref[0], preferred_element_type=jnp.float32) + bqkv_ref[0]
    q, k, v = qkv[:, :H], qkv[:, H:2 * H], qkv[:, 2 * H:]

    # --- multi-head self-attention, batched over B per head ---
    wo = wo_ref[0]                        # (H, H), rows are head-major
    attn = jnp.zeros((BS, H), jnp.float32)
    for hd in range(NUM_HEADS):           # unrolled (NUM_HEADS small & static)
        sl = slice(hd * HD, (hd + 1) * HD)
        qh = q[:, sl].reshape(B, S, HD)
        kh = k[:, sl].reshape(B, S, HD)
        vh = v[:, sl].reshape(B, S, HD)
        s = jnp.einsum("bqd,bkd->bqk", qh, kh,
                       preferred_element_type=jnp.float32) + mask     # (B,S,S)
        s = s - jnp.max(s, axis=-1, keepdims=True)
        p = jnp.exp(s)
        p = p * pl.reciprocal(jnp.sum(p, axis=-1, keepdims=True), approx=True)
        ctx = jnp.einsum("bqk,bkd->bqd", p, vh,
                         preferred_element_type=jnp.float32)          # (B,S,HD)
        # Fold this head's slab of the output projection -> no concatenate.
        attn = attn + jnp.dot(ctx.reshape(BS, HD), wo[sl, :],
                              preferred_element_type=jnp.float32)
    attn = attn + bo_ref[0]

    # --- attention output: residual + LayerNorm ---
    h1 = _layer_norm(attn + x, g1_ref[0], b1_ref[0])

    # --- feed-forward: dense + gelu + dense + residual + LayerNorm ---
    inter = _gelu(jnp.dot(h1, wi_ref[0], preferred_element_type=jnp.float32) + bi_ref[0])
    ffn = jnp.dot(inter, wf_ref[0], preferred_element_type=jnp.float32) + bf_ref[0]
    h2 = _layer_norm(ffn + h1, g2_ref[0], b2_ref[0])

    h_scr[...] = h2                       # carry to next layer (stays in VMEM)
    out_ref[0] = h2.astype(out_ref.dtype)  # this layer's encoded output


_STACKED_ORDER = ("wqkv", "bqkv", "wo", "bo", "g1", "b1",
                  "wi", "bi", "wf", "bf", "g2", "b2")


# ------------------------------- UniterEncoder -------------------------------
def _stack_layer_params(layer_params):
    """Fuse QKV (with 1/sqrt(head_dim) folded into Q) and stack over layers."""
    scale = 1.0 / math.sqrt(HEAD_DIM)

    def stack(fn):
        return jnp.stack([fn(p) for p in layer_params], axis=0)

    return dict(
        wqkv=stack(lambda p: jnp.concatenate([p["qw"] * scale, p["kw"], p["vw"]], axis=1)),
        bqkv=stack(lambda p: jnp.concatenate([p["qb"] * scale, p["kb"], p["vb"]], axis=1)),
        wo=stack(lambda p: p["aow"]), bo=stack(lambda p: p["aob"]),
        g1=stack(lambda p: p["g1"]), b1=stack(lambda p: p["b1"]),
        wi=stack(lambda p: p["iw"]), bi=stack(lambda p: p["ib"]),
        wf=stack(lambda p: p["ow"]), bf=stack(lambda p: p["ob"]),
        g2=stack(lambda p: p["g2"]), b2=stack(lambda p: p["b2"]),
    )


def uniter_encoder(hidden, extended_mask, layer_params,
                   output_all_encoded_layers=True):
    """hidden: (B,S,H); extended_mask: (B,1,S) additive; layer_params: list of dicts."""
    B, S, H = hidden.shape
    stacked = _stack_layer_params(layer_params)
    L = stacked["wqkv"].shape[0]
    weights = [stacked[name] for name in _STACKED_ORDER]

    x2d = hidden.reshape(B * S, H)        # lane/sublane-dense activation slab

    wmap = lambda l: (l, 0, 0)            # per-layer weight block
    in_specs = [
        pl.BlockSpec((B * S, H), lambda l: (0, 0)),       # hidden states (layer 0 only)
        pl.BlockSpec((B, 1, S), lambda l: (0, 0, 0)),     # additive attention mask
    ] + [pl.BlockSpec((1,) + w.shape[1:], wmap) for w in weights]

    out = pl.pallas_call(
        encoder_kernel,
        out_shape=jax.ShapeDtypeStruct((L, B * S, H), hidden.dtype),
        grid=(L,),
        in_specs=in_specs,
        out_specs=pl.BlockSpec((1, B * S, H), lambda l: (l, 0, 0)),
        scratch_shapes=[pltpu.VMEM((B * S, H), jnp.float32)],
        compiler_params=pltpu.CompilerParams(
            dimension_semantics=("arbitrary",)),  # layers are sequential (VMEM carry)
    )(x2d, extended_mask, *weights)

    out = out.reshape(L, B, S, H)
    if output_all_encoded_layers:
        return [out[l] for l in range(L)]
    return [out[L - 1]]


# ------------------------- deterministic param init --------------------------
def init_layer_params(key):
    std = 0.02
    ks = jax.random.split(key, 6)

    def lin(k, din, dout):
        # nn.Linear(din, dout) weight transposed so the kernel can do x @ W.
        return jax.random.normal(k, (din, dout), jnp.float32) * std

    zeros = lambda n: jnp.zeros((1, n), jnp.float32)
    ones = lambda n: jnp.ones((1, n), jnp.float32)
    return dict(
        qw=lin(ks[0], HIDDEN, HIDDEN), qb=zeros(HIDDEN),
        kw=lin(ks[1], HIDDEN, HIDDEN), kb=zeros(HIDDEN),
        vw=lin(ks[2], HIDDEN, HIDDEN), vb=zeros(HIDDEN),
        aow=lin(ks[3], HIDDEN, HIDDEN), aob=zeros(HIDDEN),
        g1=ones(HIDDEN), b1=zeros(HIDDEN),
        iw=lin(ks[4], HIDDEN, INTERMEDIATE), ib=zeros(INTERMEDIATE),
        ow=lin(ks[5], INTERMEDIATE, HIDDEN), ob=zeros(HIDDEN),
        g2=ones(HIDDEN), b2=zeros(HIDDEN),
    )


if __name__ == "__main__":
    B, S = 2, 8

    key = jax.random.PRNGKey(0)
    k_in, k_mask, _ = jax.random.split(key, 3)

    # encoder input embeddings
    hidden = jax.random.normal(k_in, (B, S, HIDDEN), jnp.float32)

    # boolean attention mask -> extended additive mask (B, 1, S)
    attn_mask = (jax.random.uniform(k_mask, (B, S)) > 0.2).astype(jnp.float32)
    attn_mask = attn_mask.at[:, 0].set(1.0)  # keep at least one valid token
    extended_mask = ((1.0 - attn_mask) * -10000.0)[:, None, :]

    # num_hidden_layers independent BertLayer parameter sets
    layer_keys = jax.random.split(jax.random.PRNGKey(42), NUM_LAYERS)
    layer_params = [init_layer_params(layer_keys[i]) for i in range(NUM_LAYERS)]

    # TODO(synk): training-mode dropout has no equivalent here (eval-mode only).
    all_layers = uniter_encoder(hidden, extended_mask, layer_params,
                                output_all_encoded_layers=True)
    for out in all_layers:
        jax.block_until_ready(out)

    assert len(all_layers) == NUM_LAYERS
    assert all_layers[-1].shape == (B, S, HIDDEN)
    assert all(bool(jnp.all(jnp.isfinite(o))) for o in all_layers)
    print("KERNEL_OK")
</pallas_src>

<mosaic_0001>
module attributes {stable_mosaic.version = 11 : i64} {
  func.func @encoder_kernel(%arg0: i32, %arg1: memref<16x32xf32, #tpu.memory_space<vmem>>, %arg2: memref<2x1x8xf32, #tpu.memory_space<vmem>>, %arg3: memref<1x32x96xf32, #tpu.memory_space<vmem>>, %arg4: memref<1x1x96xf32, #tpu.memory_space<vmem>>, %arg5: memref<1x32x32xf32, #tpu.memory_space<vmem>>, %arg6: memref<1x1x32xf32, #tpu.memory_space<vmem>>, %arg7: memref<1x1x32xf32, #tpu.memory_space<vmem>>, %arg8: memref<1x1x32xf32, #tpu.memory_space<vmem>>, %arg9: memref<1x32x64xf32, #tpu.memory_space<vmem>>, %arg10: memref<1x1x64xf32, #tpu.memory_space<vmem>>, %arg11: memref<1x64x32xf32, #tpu.memory_space<vmem>>, %arg12: memref<1x1x32xf32, #tpu.memory_space<vmem>>, %arg13: memref<1x1x32xf32, #tpu.memory_space<vmem>>, %arg14: memref<1x1x32xf32, #tpu.memory_space<vmem>>, %arg15: memref<1x16x32xf32, #tpu.memory_space<vmem>>, %arg16: memref<16x32xf32, #tpu.memory_space<vmem>>) attributes {dimension_semantics = [#tpu.dimension_semantics<arbitrary>], iteration_bounds = array<i64: 2>, scalar_prefetch = 0 : i64, scratch_operands = 1 : i64, tpu.core_type = #tpu.core_type<tc>, window_params = [{pipeline_mode = #tpu.pipeline_mode<synchronous>, transform_indices = @transform_0, window_bounds = array<i64: 16, 32>}, {pipeline_mode = #tpu.pipeline_mode<synchronous>, transform_indices = @transform_1, window_bounds = array<i64: 2, 1, 8>}, {transform_indices = @transform_2, window_bounds = array<i64: 1, 32, 96>}, {transform_indices = @transform_3, window_bounds = array<i64: 1, 1, 96>}, {transform_indices = @transform_4, window_bounds = array<i64: 1, 32, 32>}, {transform_indices = @transform_5, window_bounds = array<i64: 1, 1, 32>}, {transform_indices = @transform_6, window_bounds = array<i64: 1, 1, 32>}, {transform_indices = @transform_7, window_bounds = array<i64: 1, 1, 32>}, {transform_indices = @transform_8, window_bounds = array<i64: 1, 32, 64>}, {transform_indices = @transform_9, window_bounds = array<i64: 1, 1, 64>}, {transform_indices = @transform_10, window_bounds = array<i64: 1, 64, 32>}, {transform_indices = @transform_11, window_bounds = array<i64: 1, 1, 32>}, {transform_indices = @transform_12, window_bounds = array<i64: 1, 1, 32>}, {transform_indices = @transform_13, window_bounds = array<i64: 1, 1, 32>}, {transform_indices = @transform_14, window_bounds = array<i64: 1, 16, 32>}]} {
    %c0_i32 = arith.constant 0 : i32
    %0 = arith.cmpi eq, %arg0, %c0_i32 : i32
    %1 = arith.extui %0 : i1 to i32
    %c0_i32_0 = arith.constant 0 : i32
    %2 = arith.cmpi ne, %1, %c0_i32_0 : i32
    scf.if %2 {
      %c0_96 = arith.constant 0 : index
      %c0_97 = arith.constant 0 : index
      %234 = vector.load %arg1[%c0_96, %c0_97] : memref<16x32xf32, #tpu.memory_space<vmem>>, vector<16x32xf32>
      %c0_98 = arith.constant 0 : index
      %c0_99 = arith.constant 0 : index
      %235 = vector.load %arg16[%c0_98, %c0_99] : memref<16x32xf32, #tpu.memory_space<vmem>>, vector<16x32xf32>
      tpu.vector_store %arg16[%c0_98, %c0_99], %234 {strides = array<i32>} : memref<16x32xf32, #tpu.memory_space<vmem>>, vector<16x32xf32>,
    } else {
    }
    %c0 = arith.constant 0 : index
    %c0_1 = arith.constant 0 : index
    %3 = vector.load %arg16[%c0, %c0_1] : memref<16x32xf32, #tpu.memory_space<vmem>>, vector<16x32xf32>
    %c0_2 = arith.constant 0 : index
    %c0_3 = arith.constant 0 : index
    %c0_4 = arith.constant 0 : index
    %4 = vector.load %arg2[%c0_2, %c0_3, %c0_4] : memref<2x1x8xf32, #tpu.memory_space<vmem>>, vector<2x1x8xf32>
    %c0_5 = arith.constant 0 : index
    %c0_6 = arith.constant 0 : index
    %c0_7 = arith.constant 0 : index
    %5 = vector.load %arg3[%c0_5, %c0_6, %c0_7] : memref<1x32x96xf32, #tpu.memory_space<vmem>>, vector<1x32x96xf32>
    %6 = vector.shape_cast %5 : vector<1x32x96xf32> to vector<32x96xf32>
    %cst = arith.constant dense<0.000000e+00> : vector<16x96xf32>
    %7 = tpu.matmul %3, %6, %cst {dimension_numbers = #tpu.dot_dimension_numbers<[1], [0], [0], [1], [0, 0, 1, 1], [], []>} : vector<16x32xf32>, vector<32x96xf32>, vector<16x96xf32> -> vector<16x96xf32>
    %c0_8 = arith.constant 0 : index
    %c0_9 = arith.constant 0 : index
    %c0_10 = arith.constant 0 : index
    %8 = vector.load %arg4[%c0_8, %c0_9, %c0_10] : memref<1x1x96xf32, #tpu.memory_space<vmem>>, vector<1x1x96xf32>
    %9 = vector.shape_cast %8 : vector<1x1x96xf32> to vector<1x96xf32>
    %10 = vector.broadcast %9 : vector<1x96xf32> to vector<16x96xf32>
    %11 = arith.addf %7, %10 : vector<16x96xf32>
    %12 = vector.extract_strided_slice %11 {offsets = [0, 0], sizes = [16, 32], strides = [1, 1]} : vector<16x96xf32> to vector<16x32xf32>
    %13 = vector.extract_strided_slice %11 {offsets = [0, 32], sizes = [16, 32], strides = [1, 1]} : vector<16x96xf32> to vector<16x32xf32>
    %14 = vector.extract_strided_slice %11 {offsets = [0, 64], sizes = [16, 32], strides = [1, 1]} : vector<16x96xf32> to vector<16x32xf32>
    %c0_11 = arith.constant 0 : index
    %c0_12 = arith.constant 0 : index
    %c0_13 = arith.constant 0 : index
    %15 = vector.load %arg5[%c0_11, %c0_12, %c0_13] : memref<1x32x32xf32, #tpu.memory_space<vmem>>, vector<1x32x32xf32>
    %16 = vector.shape_cast %15 : vector<1x32x32xf32> to vector<32x32xf32>
    %cst_14 = arith.constant 0.000000e+00 : f32
    %17 = vector.broadcast %cst_14 : f32 to vector<16x32xf32>
    %18 = vector.extract_strided_slice %12 {offsets = [0, 0], sizes = [16, 8], strides = [1, 1]} : vector<16x32xf32> to vector<16x8xf32>
    %19 = vector.shape_cast %18 : vector<16x8xf32> to vector<2x8x8xf32>
    %20 = vector.extract_strided_slice %13 {offsets = [0, 0], sizes = [16, 8], strides = [1, 1]} : vector<16x32xf32> to vector<16x8xf32>
    %21 = vector.shape_cast %20 : vector<16x8xf32> to vector<2x8x8xf32>
    %22 = vector.extract_strided_slice %14 {offsets = [0, 0], sizes = [16, 8], strides = [1, 1]} : vector<16x32xf32> to vector<16x8xf32>
    %23 = vector.shape_cast %22 : vector<16x8xf32> to vector<2x8x8xf32>
    "tpu.trace_start"() <{level = 10 : i32, message = "bqd,bkd->bqk"}> : () -> ()
    %cst_15 = arith.constant dense<0.000000e+00> : vector<2x8x8xf32>
    %24 = tpu.matmul %19, %21, %cst_15 {dimension_numbers = #tpu.dot_dimension_numbers<[2], [2], [1], [1], [0, 0, 0, 1, 1, 1], [0], [0]>} : vector<2x8x8xf32>, vector<2x8x8xf32>, vector<2x8x8xf32> -> vector<2x8x8xf32>
    "tpu.trace_stop"() : () -> ()
    %25 = vector.broadcast %4 : vector<2x1x8xf32> to vector<2x8x8xf32>
    %26 = arith.addf %24, %25 : vector<2x8x8xf32>
    %cst_16 = arith.constant dense<0xFF800000> : vector<2x8xf32>
    %27 = vector.multi_reduction <maximumf>, %26, %cst_16 [2] : vector<2x8x8xf32> to vector<2x8xf32>
    %28 = vector.shape_cast %27 : vector<2x8xf32> to vector<2x8x1xf32>
    %29 = vector.broadcast %28 : vector<2x8x1xf32> to vector<2x8x8xf32>
    %30 = arith.subf %26, %29 : vector<2x8x8xf32>
    %31 = math.exp %30 : vector<2x8x8xf32>
    %cst_17 = arith.constant dense<0.000000e+00> : vector<2x8xf32>
    %32 = vector.multi_reduction <add>, %31, %cst_17 [2] : vector<2x8x8xf32> to vector<2x8xf32>
    %33 = vector.shape_cast %32 : vector<2x8xf32> to vector<2x8x1xf32>
    %34 = tpu.reciprocal %33 {approx = true} : vector<2x8x1xf32> -> vector<2x8x1xf32>
    %35 = vector.broadcast %34 : vector<2x8x1xf32> to vector<2x8x8xf32>
    %36 = arith.mulf %31, %35 : vector<2x8x8xf32>
    "tpu.trace_start"() <{level = 10 : i32, message = "bqk,bkd->bqd"}> : () -> ()
    %cst_18 = arith.constant dense<0.000000e+00> : vector<2x8x8xf32>
    %37 = tpu.matmul %36, %23, %cst_18 {dimension_numbers = #tpu.dot_dimension_numbers<[2], [1], [1], [2], [0, 0, 0, 1, 1, 2], [0], [0]>} : vector<2x8x8xf32>, vector<2x8x8xf32>, vector<2x8x8xf32> -> vector<2x8x8xf32>
    "tpu.trace_stop"() : () -> ()
    %38 = vector.shape_cast %37 : vector<2x8x8xf32> to vector<16x8xf32>
    %39 = vector.extract_strided_slice %16 {offsets = [0, 0], sizes = [8, 32], strides = [1, 1]} : vector<32x32xf32> to vector<8x32xf32>
    %cst_19 = arith.constant dense<0.000000e+00> : vector<16x32xf32>
    %40 = tpu.matmul %38, %39, %cst_19 {dimension_numbers = #tpu.dot_dimension_numbers<[1], [0], [0], [1], [0, 0, 1, 1], [], []>} : vector<16x8xf32>, vector<8x32xf32>, vector<16x32xf32> -> vector<16x32xf32>
    %41 = arith.addf %17, %40 : vector<16x32xf32>
    %42 = vector.extract_strided_slice %12 {offsets = [0, 8], sizes = [16, 8], strides = [1, 1]} : vector<16x32xf32> to vector<16x8xf32>
    %43 = vector.shape_cast %42 : vector<16x8xf32> to vector<2x8x8xf32>
    %44 = vector.extract_strided_slice %13 {offsets = [0, 8], sizes = [16, 8], strides = [1, 1]} : vector<16x32xf32> to vector<16x8xf32>
    %45 = vector.shape_cast %44 : vector<16x8xf32> to vector<2x8x8xf32>
    %46 = vector.extract_strided_slice %14 {offsets = [0, 8], sizes = [16, 8], strides = [1, 1]} : vector<16x32xf32> to vector<16x8xf32>
    %47 = vector.shape_cast %46 : vector<16x8xf32> to vector<2x8x8xf32>
    "tpu.trace_start"() <{level = 10 : i32, message = "bqd,bkd->bqk"}> : () -> ()
    %cst_20 = arith.constant dense<0.000000e+00> : vector<2x8x8xf32>
    %48 = tpu.matmul %43, %45, %cst_20 {dimension_numbers = #tpu.dot_dimension_numbers<[2], [2], [1], [1], [0, 0, 0, 1, 1, 1], [0], [0]>} : vector<2x8x8xf32>, vector<2x8x8xf32>, vector<2x8x8xf32> -> vector<2x8x8xf32>
    "tpu.trace_stop"() : () -> ()
    %49 = vector.broadcast %4 : vector<2x1x8xf32> to vector<2x8x8xf32>
    %50 = arith.addf %48, %49 : vector<2x8x8xf32>
    %cst_21 = arith.constant dense<0xFF800000> : vector<2x8xf32>
    %51 = vector.multi_reduction <maximumf>, %50, %cst_21 [2] : vector<2x8x8xf32> to vector<2x8xf32>
    %52 = vector.shape_cast %51 : vector<2x8xf32> to vector<2x8x1xf32>
    %53 = vector.broadcast %52 : vector<2x8x1xf32> to vector<2x8x8xf32>
    %54 = arith.subf %50, %53 : vector<2x8x8xf32>
    %55 = math.exp %54 : vector<2x8x8xf32>
    %cst_22 = arith.constant dense<0.000000e+00> : vector<2x8xf32>
    %56 = vector.multi_reduction <add>, %55, %cst_22 [2] : vector<2x8x8xf32> to vector<2x8xf32>
    %57 = vector.shape_cast %56 : vector<2x8xf32> to vector<2x8x1xf32>
    %58 = tpu.reciprocal %57 {approx = true} : vector<2x8x1xf32> -> vector<2x8x1xf32>
    %59 = vector.broadcast %58 : vector<2x8x1xf32> to vector<2x8x8xf32>
    %60 = arith.mulf %55, %59 : vector<2x8x8xf32>
    "tpu.trace_start"() <{level = 10 : i32, message = "bqk,bkd->bqd"}> : () -> ()
    %cst_23 = arith.constant dense<0.000000e+00> : vector<2x8x8xf32>
    %61 = tpu.matmul %60, %47, %cst_23 {dimension_numbers = #tpu.dot_dimension_numbers<[2], [1], [1], [2], [0, 0, 0, 1, 1, 2], [0], [0]>} : vector<2x8x8xf32>, vector<2x8x8xf32>, vector<2x8x8xf32> -> vector<2x8x8xf32>
    "tpu.trace_stop"() : () -> ()
    %62 = vector.shape_cast %61 : vector<2x8x8xf32> to vector<16x8xf32>
    %63 = vector.extract_strided_slice %16 {offsets = [8, 0], sizes = [8, 32], strides = [1, 1]} : vector<32x32xf32> to vector<8x32xf32>
    %cst_24 = arith.constant dense<0.000000e+00> : vector<16x32xf32>
    %64 = tpu.matmul %62, %63, %cst_24 {dimension_numbers = #tpu.dot_dimension_numbers<[1], [0], [0], [1], [0, 0, 1, 1], [], []>} : vector<16x8xf32>, vector<8x32xf32>, vector<16x32xf32> -> vector<16x32xf32>
    %65 = arith.addf %41, %64 : vector<16x32xf32>
    %66 = vector.extract_strided_slice %12 {offsets = [0, 16], sizes = [16, 8], strides = [1, 1]} : vector<16x32xf32> to vector<16x8xf32>
    %67 = vector.shape_cast %66 : vector<16x8xf32> to vector<2x8x8xf32>
    %68 = vector.extract_strided_slice %13 {offsets = [0, 16], sizes = [16, 8], strides = [1, 1]} : vector<16x32xf32> to vector<16x8xf32>
    %69 = vector.shape_cast %68 : vector<16x8xf32> to vector<2x8x8xf32>
    %70 = vector.extract_strided_slice %14 {offsets = [0, 16], sizes = [16, 8], strides = [1, 1]} : vector<16x32xf32> to vector<16x8xf32>
    %71 = vector.shape_cast %70 : vector<16x8xf32> to vector<2x8x8xf32>
    "tpu.trace_start"() <{level = 10 : i32, message = "bqd,bkd->bqk"}> : () -> ()
    %cst_25 = arith.constant dense<0.000000e+00> : vector<2x8x8xf32>
    %72 = tpu.matmul %67, %69, %cst_25 {dimension_numbers = #tpu.dot_dimension_numbers<[2], [2], [1], [1], [0, 0, 0, 1, 1, 1], [0], [0]>} : vector<2x8x8xf32>, vector<2x8x8xf32>, vector<2x8x8xf32> -> vector<2x8x8xf32>
    "tpu.trace_stop"() : () -> ()
    %73 = vector.broadcast %4 : vector<2x1x8xf32> to vector<2x8x8xf32>
    %74 = arith.addf %72, %73 : vector<2x8x8xf32>
    %cst_26 = arith.constant dense<0xFF800000> : vector<2x8xf32>
    %75 = vector.multi_reduction <maximumf>, %74, %cst_26 [2] : vector<2x8x8xf32> to vector<2x8xf32>
    %76 = vector.shape_cast %75 : vector<2x8xf32> to vector<2x8x1xf32>
    %77 = vector.broadcast %76 : vector<2x8x1xf32> to vector<2x8x8xf32>
    %78 = arith.subf %74, %77 : vector<2x8x8xf32>
    %79 = math.exp %78 : vector<2x8x8xf32>
    %cst_27 = arith.constant dense<0.000000e+00> : vector<2x8xf32>
    %80 = vector.multi_reduction <add>, %79, %cst_27 [2] : vector<2x8x8xf32> to vector<2x8xf32>
    %81 = vector.shape_cast %80 : vector<2x8xf32> to vector<2x8x1xf32>
    %82 = tpu.reciprocal %81 {approx = true} : vector<2x8x1xf32> -> vector<2x8x1xf32>
    %83 = vector.broadcast %82 : vector<2x8x1xf32> to vector<2x8x8xf32>
    %84 = arith.mulf %79, %83 : vector<2x8x8xf32>
    "tpu.trace_start"() <{level = 10 : i32, message = "bqk,bkd->bqd"}> : () -> ()
    %cst_28 = arith.constant dense<0.000000e+00> : vector<2x8x8xf32>
    %85 = tpu.matmul %84, %71, %cst_28 {dimension_numbers = #tpu.dot_dimension_numbers<[2], [1], [1], [2], [0, 0, 0, 1, 1, 2], [0], [0]>} : vector<2x8x8xf32>, vector<2x8x8xf32>, vector<2x8x8xf32> -> vector<2x8x8xf32>
    "tpu.trace_stop"() : () -> ()
    %86 = vector.shape_cast %85 : vector<2x8x8xf32> to vector<16x8xf32>
    %87 = vector.extract_strided_slice %16 {offsets = [16, 0], sizes = [8, 32], strides = [1, 1]} : vector<32x32xf32> to vector<8x32xf32>
    %cst_29 = arith.constant dense<0.000000e+00> : vector<16x32xf32>
    %88 = tpu.matmul %86, %87, %cst_29 {dimension_numbers = #tpu.dot_dimension_numbers<[1], [0], [0], [1], [0, 0, 1, 1], [], []>} : vector<16x8xf32>, vector<8x32xf32>, vector<16x32xf32> -> vector<16x32xf32>
    %89 = arith.addf %65, %88 : vector<16x32xf32>
    %90 = vector.extract_strided_slice %12 {offsets = [0, 24], sizes = [16, 8], strides = [1, 1]} : vector<16x32xf32> to vector<16x8xf32>
    %91 = vector.shape_cast %90 : vector<16x8xf32> to vector<2x8x8xf32>
    %92 = vector.extract_strided_slice %13 {offsets = [0, 24], sizes = [16, 8], strides = [1, 1]} : vector<16x32xf32> to vector<16x8xf32>
    %93 = vector.shape_cast %92 : vector<16x8xf32> to vector<2x8x8xf32>
    %94 = vector.extract_strided_slice %14 {offsets = [0, 24], sizes = [16, 8], strides = [1, 1]} : vector<16x32xf32> to vector<16x8xf32>
    %95 = vector.shape_cast %94 : vector<16x8xf32> to vector<2x8x8xf32>
    "tpu.trace_start"() <{level = 10 : i32, message = "bqd,bkd->bqk"}> : () -> ()
    %cst_30 = arith.constant dense<0.000000e+00> : vector<2x8x8xf32>
    %96 = tpu.matmul %91, %93, %cst_30 {dimension_numbers = #tpu.dot_dimension_numbers<[2], [2], [1], [1], [0, 0, 0, 1, 1, 1], [0], [0]>} : vector<2x8x8xf32>, vector<2x8x8xf32>, vector<2x8x8xf32> -> vector<2x8x8xf32>
    "tpu.trace_stop"() : () -> ()
    %97 = vector.broadcast %4 : vector<2x1x8xf32> to vector<2x8x8xf32>
    %98 = arith.addf %96, %97 : vector<2x8x8xf32>
    %cst_31 = arith.constant dense<0xFF800000> : vector<2x8xf32>
    %99 = vector.multi_reduction <maximumf>, %98, %cst_31 [2] : vector<2x8x8xf32> to vector<2x8xf32>
    %100 = vector.shape_cast %99 : vector<2x8xf32> to vector<2x8x1xf32>
    %101 = vector.broadcast %100 : vector<2x8x1xf32> to vector<2x8x8xf32>
    %102 = arith.subf %98, %101 : vector<2x8x8xf32>
    %103 = math.exp %102 : vector<2x8x8xf32>
    %cst_32 = arith.constant dense<0.000000e+00> : vector<2x8xf32>
    %104 = vector.multi_reduction <add>, %103, %cst_32 [2] : vector<2x8x8xf32> to vector<2x8xf32>
    %105 = vector.shape_cast %104 : vector<2x8xf32> to vector<2x8x1xf32>
    %106 = tpu.reciprocal %105 {approx = true} : vector<2x8x1xf32> -> vector<2x8x1xf32>
    %107 = vector.broadcast %106 : vector<2x8x1xf32> to vector<2x8x8xf32>
    %108 = arith.mulf %103, %107 : vector<2x8x8xf32>
    "tpu.trace_start"() <{level = 10 : i32, message = "bqk,bkd->bqd"}> : () -> ()
    %cst_33 = arith.constant dense<0.000000e+00> : vector<2x8x8xf32>
    %109 = tpu.matmul %108, %95, %cst_33 {dimension_numbers = #tpu.dot_dimension_numbers<[2], [1], [1], [2], [0, 0, 0, 1, 1, 2], [0], [0]>} : vector<2x8x8xf32>, vector<2x8x8xf32>, vector<2x8x8xf32> -> vector<2x8x8xf32>
    "tpu.trace_stop"() : () -> ()
    %110 = vector.shape_cast %109 : vector<2x8x8xf32> to vector<16x8xf32>
    %111 = vector.extract_strided_slice %16 {offsets = [24, 0], sizes = [8, 32], strides = [1, 1]} : vector<32x32xf32> to vector<8x32xf32>
    %cst_34 = arith.constant dense<0.000000e+00> : vector<16x32xf32>
    %112 = tpu.matmul %110, %111, %cst_34 {dimension_numbers = #tpu.dot_dimension_numbers<[1], [0], [0], [1], [0, 0, 1, 1], [], []>} : vector<16x8xf32>, vector<8x32xf32>, vector<16x32xf32> -> vector<16x32xf32>
    %113 = arith.addf %89, %112 : vector<16x32xf32>
    %c0_35 = arith.constant 0 : index
    %c0_36 = arith.constant 0 : index
    %c0_37 = arith.constant 0 : index
    %114 = vector.load %arg6[%c0_35, %c0_36, %c0_37] : memref<1x1x32xf32, #tpu.memory_space<vmem>>, vector<1x1x32xf32>
    %115 = vector.shape_cast %114 : vector<1x1x32xf32> to vector<1x32xf32>
    %116 = vector.broadcast %115 : vector<1x32xf32> to vector<16x32xf32>
    %117 = arith.addf %113, %116 : vector<16x32xf32>
    %118 = arith.addf %117, %3 : vector<16x32xf32>
    %c0_38 = arith.constant 0 : index
    %c0_39 = arith.constant 0 : index
    %c0_40 = arith.constant 0 : index
    %119 = vector.load %arg7[%c0_38, %c0_39, %c0_40] : memref<1x1x32xf32, #tpu.memory_space<vmem>>, vector<1x1x32xf32>
    %120 = vector.shape_cast %119 : vector<1x1x32xf32> to vector<1x32xf32>
    %c0_41 = arith.constant 0 : index
    %c0_42 = arith.constant 0 : index
    %c0_43 = arith.constant 0 : index
    %121 = vector.load %arg8[%c0_41, %c0_42, %c0_43] : memref<1x1x32xf32, #tpu.memory_space<vmem>>, vector<1x1x32xf32>
    %122 = vector.shape_cast %121 : vector<1x1x32xf32> to vector<1x32xf32>
    %cst_44 = arith.constant dense<0.000000e+00> : vector<16xf32>
    %123 = vector.multi_reduction <add>, %118, %cst_44 [1] : vector<16x32xf32> to vector<16xf32>
    %124 = vector.shape_cast %123 : vector<16xf32> to vector<16x1xf32>
    %cst_45 = arith.constant 3.200000e+01 : f32
    %125 = vector.broadcast %cst_45 : f32 to vector<16x1xf32>
    %126 = arith.divf %124, %125 : vector<16x1xf32>
    %127 = arith.mulf %118, %118 : vector<16x32xf32>
    %cst_46 = arith.constant dense<0.000000e+00> : vector<16xf32>
    %128 = vector.multi_reduction <add>, %127, %cst_46 [1] : vector<16x32xf32> to vector<16xf32>
    %129 = vector.shape_cast %128 : vector<16xf32> to vector<16x1xf32>
    %cst_47 = arith.constant 3.200000e+01 : f32
    %130 = vector.broadcast %cst_47 : f32 to vector<16x1xf32>
    %131 = arith.divf %129, %130 : vector<16x1xf32>
    %132 = arith.mulf %126, %126 : vector<16x1xf32>
    %133 = arith.subf %131, %132 : vector<16x1xf32>
    %cst_48 = arith.constant 0.000000e+00 : f32
    %134 = vector.broadcast %cst_48 : f32 to vector<16x1xf32>
    %135 = arith.maximumf %133, %134 : vector<16x1xf32>
    %cst_49 = arith.constant 9.99999996E-13 : f32
    %136 = vector.broadcast %cst_49 : f32 to vector<16x1xf32>
    %137 = arith.addf %135, %136 : vector<16x1xf32>
    %138 = math.rsqrt %137 : vector<16x1xf32>
    %139 = vector.broadcast %126 : vector<16x1xf32> to vector<16x32xf32>
    %140 = arith.subf %118, %139 : vector<16x32xf32>
    %141 = vector.broadcast %138 : vector<16x1xf32> to vector<16x32xf32>
    %142 = arith.mulf %140, %141 : vector<16x32xf32>
    %143 = vector.broadcast %120 : vector<1x32xf32> to vector<16x32xf32>
    %144 = arith.mulf %142, %143 : vector<16x32xf32>
    %145 = vector.broadcast %122 : vector<1x32xf32> to vector<16x32xf32>
    %146 = arith.addf %144, %145 : vector<16x32xf32>
    %c0_50 = arith.constant 0 : index
    %c0_51 = arith.constant 0 : index
    %c0_52 = arith.constant 0 : index
    %147 = vector.load %arg9[%c0_50, %c0_51, %c0_52] : memref<1x32x64xf32, #tpu.memory_space<vmem>>, vector<1x32x64xf32>
    %148 = vector.shape_cast %147 : vector<1x32x64xf32> to vector<32x64xf32>
    %cst_53 = arith.constant dense<0.000000e+00> : vector<16x64xf32>
    %149 = tpu.matmul %146, %148, %cst_53 {dimension_numbers = #tpu.dot_dimension_numbers<[1], [0], [0], [1], [0, 0, 1, 1], [], []>} : vector<16x32xf32>, vector<32x64xf32>, vector<16x64xf32> -> vector<16x64xf32>
    %c0_54 = arith.constant 0 : index
    %c0_55 = arith.constant 0 : index
    %c0_56 = arith.constant 0 : index
    %150 = vector.load %arg10[%c0_54, %c0_55, %c0_56] : memref<1x1x64xf32, #tpu.memory_space<vmem>>, vector<1x1x64xf32>
    %151 = vector.shape_cast %150 : vector<1x1x64xf32> to vector<1x64xf32>
    %152 = vector.broadcast %151 : vector<1x64xf32> to vector<16x64xf32>
    %153 = arith.addf %149, %152 : vector<16x64xf32>
    %cst_57 = arith.constant 5.000000e-01 : f32
    %154 = vector.broadcast %cst_57 : f32 to vector<16x64xf32>
    %155 = arith.mulf %154, %153 : vector<16x64xf32>
    %cst_58 = arith.constant 0.707106769 : f32
    %156 = vector.broadcast %cst_58 : f32 to vector<16x64xf32>
    %157 = arith.mulf %153, %156 : vector<16x64xf32>
    %158 = math.absf %157 : vector<16x64xf32>
    %cst_59 = arith.constant 0.327591091 : f32
    %159 = vector.broadcast %cst_59 : f32 to vector<16x64xf32>
    %160 = arith.mulf %159, %158 : vector<16x64xf32>
    %cst_60 = arith.constant 1.000000e+00 : f32
    %161 = vector.broadcast %cst_60 : f32 to vector<16x64xf32>
    %162 = arith.addf %161, %160 : vector<16x64xf32>
    %cst_61 = arith.constant 1.000000e+00 : f32
    %163 = vector.broadcast %cst_61 : f32 to vector<16x64xf32>
    %164 = arith.divf %163, %162 : vector<16x64xf32>
    %cst_62 = arith.constant 1.06140542 : f32
    %165 = vector.broadcast %cst_62 : f32 to vector<16x64xf32>
    %166 = arith.mulf %165, %164 : vector<16x64xf32>
    %cst_63 = arith.constant -1.45315206 : f32
    %167 = vector.broadcast %cst_63 : f32 to vector<16x64xf32>
    %168 = arith.addf %166, %167 : vector<16x64xf32>
    %169 = arith.mulf %168, %164 : vector<16x64xf32>
    %cst_64 = arith.constant 1.42141378 : f32
    %170 = vector.broadcast %cst_64 : f32 to vector<16x64xf32>
    %171 = arith.addf %169, %170 : vector<16x64xf32>
    %172 = arith.mulf %171, %164 : vector<16x64xf32>
    %cst_65 = arith.constant -0.284496725 : f32
    %173 = vector.broadcast %cst_65 : f32 to vector<16x64xf32>
    %174 = arith.addf %172, %173 : vector<16x64xf32>
    %175 = arith.mulf %174, %164 : vector<16x64xf32>
    %cst_66 = arith.constant 0.254829586 : f32
    %176 = vector.broadcast %cst_66 : f32 to vector<16x64xf32>
    %177 = arith.addf %175, %176 : vector<16x64xf32>
    %178 = arith.mulf %177, %164 : vector<16x64xf32>
    %cst_67 = arith.constant 0.000000e+00 : f32
    %179 = vector.broadcast %cst_67 : f32 to vector<16x64xf32>
    %180 = arith.subf %179, %158 : vector<16x64xf32>
    %181 = arith.mulf %180, %158 : vector<16x64xf32>
    %182 = math.exp %181 : vector<16x64xf32>
    %183 = arith.mulf %178, %182 : vector<16x64xf32>
    %cst_68 = arith.constant 1.000000e+00 : f32
    %184 = vector.broadcast %cst_68 : f32 to vector<16x64xf32>
    %185 = arith.subf %184, %183 : vector<16x64xf32>
    %cst_69 = arith.constant 0.000000e+00 : f32
    %186 = vector.broadcast %cst_69 : f32 to vector<16x64xf32>
    %187 = arith.cmpf olt, %157, %186 : vector<16x64xf32>
    %cst_70 = arith.constant 0.000000e+00 : f32
    %188 = vector.broadcast %cst_70 : f32 to vector<16x64xf32>
    %189 = arith.subf %188, %185 : vector<16x64xf32>
    %190 = arith.select %187, %189, %185 : vector<16x64xi1>, vector<16x64xf32>
    %cst_71 = arith.constant 1.000000e+00 : f32
    %191 = vector.broadcast %cst_71 : f32 to vector<16x64xf32>
    %192 = arith.addf %191, %190 : vector<16x64xf32>
    %193 = arith.mulf %155, %192 : vector<16x64xf32>
    %c0_72 = arith.constant 0 : index
    %c0_73 = arith.constant 0 : index
    %c0_74 = arith.constant 0 : index
    %194 = vector.load %arg11[%c0_72, %c0_73, %c0_74] : memref<1x64x32xf32, #tpu.memory_space<vmem>>, vector<1x64x32xf32>
    %195 = vector.shape_cast %194 : vector<1x64x32xf32> to vector<64x32xf32>
    %cst_75 = arith.constant dense<0.000000e+00> : vector<16x32xf32>
    %196 = tpu.matmul %193, %195, %cst_75 {dimension_numbers = #tpu.dot_dimension_numbers<[1], [0], [0], [1], [0, 0, 1, 1], [], []>} : vector<16x64xf32>, vector<64x32xf32>, vector<16x32xf32> -> vector<16x32xf32>
    %c0_76 = arith.constant 0 : index
    %c0_77 = arith.constant 0 : index
    %c0_78 = arith.constant 0 : index
    %197 = vector.load %arg12[%c0_76, %c0_77, %c0_78] : memref<1x1x32xf32, #tpu.memory_space<vmem>>, vector<1x1x32xf32>
    %198 = vector.shape_cast %197 : vector<1x1x32xf32> to vector<1x32xf32>
    %199 = vector.broadcast %198 : vector<1x32xf32> to vector<16x32xf32>
    %200 = arith.addf %196, %199 : vector<16x32xf32>
    %201 = arith.addf %200, %146 : vector<16x32xf32>
    %c0_79 = arith.constant 0 : index
    %c0_80 = arith.constant 0 : index
    %c0_81 = arith.constant 0 : index
    %202 = vector.load %arg13[%c0_79, %c0_80, %c0_81] : memref<1x1x32xf32, #tpu.memory_space<vmem>>, vector<1x1x32xf32>
    %203 = vector.shape_cast %202 : vector<1x1x32xf32> to vector<1x32xf32>
    %c0_82 = arith.constant 0 : index
    %c0_83 = arith.constant 0 : index
    %c0_84 = arith.constant 0 : index
    %204 = vector.load %arg14[%c0_82, %c0_83, %c0_84] : memref<1x1x32xf32, #tpu.memory_space<vmem>>, vector<1x1x32xf32>
    %205 = vector.shape_cast %204 : vector<1x1x32xf32> to vector<1x32xf32>
    %cst_85 = arith.constant dense<0.000000e+00> : vector<16xf32>
    %206 = vector.multi_reduction <add>, %201, %cst_85 [1] : vector<16x32xf32> to vector<16xf32>
    %207 = vector.shape_cast %206 : vector<16xf32> to vector<16x1xf32>
    %cst_86 = arith.constant 3.200000e+01 : f32
    %208 = vector.broadcast %cst_86 : f32 to vector<16x1xf32>
    %209 = arith.divf %207, %208 : vector<16x1xf32>
    %210 = arith.mulf %201, %201 : vector<16x32xf32>
    %cst_87 = arith.constant dense<0.000000e+00> : vector<16xf32>
    %211 = vector.multi_reduction <add>, %210, %cst_87 [1] : vector<16x32xf32> to vector<16xf32>
    %212 = vector.shape_cast %211 : vector<16xf32> to vector<16x1xf32>
    %cst_88 = arith.constant 3.200000e+01 : f32
    %213 = vector.broadcast %cst_88 : f32 to vector<16x1xf32>
    %214 = arith.divf %212, %213 : vector<16x1xf32>
    %215 = arith.mulf %209, %209 : vector<16x1xf32>
    %216 = arith.subf %214, %215 : vector<16x1xf32>
    %cst_89 = arith.constant 0.000000e+00 : f32
    %217 = vector.broadcast %cst_89 : f32 to vector<16x1xf32>
    %218 = arith.maximumf %216, %217 : vector<16x1xf32>
    %cst_90 = arith.constant 9.99999996E-13 : f32
    %219 = vector.broadcast %cst_90 : f32 to vector<16x1xf32>
    %220 = arith.addf %218, %219 : vector<16x1xf32>
    %221 = math.rsqrt %220 : vector<16x1xf32>
    %222 = vector.broadcast %209 : vector<16x1xf32> to vector<16x32xf32>
    %223 = arith.subf %201, %222 : vector<16x32xf32>
    %224 = vector.broadcast %221 : vector<16x1xf32> to vector<16x32xf32>
    %225 = arith.mulf %223, %224 : vector<16x32xf32>
    %226 = vector.broadcast %203 : vector<1x32xf32> to vector<16x32xf32>
    %227 = arith.mulf %225, %226 : vector<16x32xf32>
    %228 = vector.broadcast %205 : vector<1x32xf32> to vector<16x32xf32>
    %229 = arith.addf %227, %228 : vector<16x32xf32>
    %c0_91 = arith.constant 0 : index
    %c0_92 = arith.constant 0 : index
    %230 = vector.load %arg16[%c0_91, %c0_92] : memref<16x32xf32, #tpu.memory_space<vmem>>, vector<16x32xf32>
    tpu.vector_store %arg16[%c0_91, %c0_92], %229 {strides = array<i32>} : memref<16x32xf32, #tpu.memory_space<vmem>>, vector<16x32xf32>,
    %c0_93 = arith.constant 0 : index
    %c0_94 = arith.constant 0 : index
    %c0_95 = arith.constant 0 : index
    %231 = vector.load %arg15[%c0_93, %c0_94, %c0_95] : memref<1x16x32xf32, #tpu.memory_space<vmem>>, vector<1x16x32xf32>
    %232 = vector.shape_cast %231 : vector<1x16x32xf32> to vector<16x32xf32>
    %233 = vector.shape_cast %229 : vector<16x32xf32> to vector<1x16x32xf32>
    tpu.vector_store %arg15[%c0_93, %c0_94, %c0_95], %233 {strides = array<i32>} : memref<1x16x32xf32, #tpu.memory_space<vmem>>, vector<1x16x32xf32>,
    return
  }
  func.func @transform_0(%arg0: i32) -> (i32, i32) {
    %c0_i32 = arith.constant 0 : i32
    %c0_i32_0 = arith.constant 0 : i32
    %c0_i32_1 = arith.constant 0 : i32
    return %c0_i32, %c0_i32_0 : i32, i32
  }
  func.func @transform_1(%arg0: i32) -> (i32, i32, i32) {
    %c0_i32 = arith.constant 0 : i32
    %c0_i32_0 = arith.constant 0 : i32
    %c0_i32_1 = arith.constant 0 : i32
    %c0_i32_2 = arith.constant 0 : i32
    return %c0_i32, %c0_i32_0, %c0_i32_1 : i32, i32, i32
  }
  func.func @transform_2(%arg0: i32) -> (i32, i32, i32) {
    %c0_i32 = arith.constant 0 : i32
    %c0_i32_0 = arith.constant 0 : i32
    %c0_i32_1 = arith.constant 0 : i32
    return %arg0, %c0_i32, %c0_i32_0 : i32, i32, i32
  }
  func.func @transform_3(%arg0: i32) -> (i32, i32, i32) {
    %c0_i32 = arith.constant 0 : i32
    %c0_i32_0 = arith.constant 0 : i32
    %c0_i32_1 = arith.constant 0 : i32
    return %arg0, %c0_i32, %c0_i32_0 : i32, i32, i32
  }
  func.func @transform_4(%arg0: i32) -> (i32, i32, i32) {
    %c0_i32 = arith.constant 0 : i32
    %c0_i32_0 = arith.constant 0 : i32
    %c0_i32_1 = arith.constant 0 : i32
    return %arg0, %c0_i32, %c0_i32_0 : i32, i32, i32
  }
  func.func @transform_5(%arg0: i32) -> (i32, i32, i32) {
    %c0_i32 = arith.constant 0 : i32
    %c0_i32_0 = arith.constant 0 : i32
    %c0_i32_1 = arith.constant 0 : i32
    return %arg0, %c0_i32, %c0_i32_0 : i32, i32, i32
  }
  func.func @transform_6(%arg0: i32) -> (i32, i32, i32) {
    %c0_i32 = arith.constant 0 : i32
    %c0_i32_0 = arith.constant 0 : i32
    %c0_i32_1 = arith.constant 0 : i32
    return %arg0, %c0_i32, %c0_i32_0 : i32, i32, i32
  }
  func.func @transform_7(%arg0: i32) -> (i32, i32, i32) {
    %c0_i32 = arith.constant 0 : i32
    %c0_i32_0 = arith.constant 0 : i32
    %c0_i32_1 = arith.constant 0 : i32
    return %arg0, %c0_i32, %c0_i32_0 : i32, i32, i32
  }
  func.func @transform_8(%arg0: i32) -> (i32, i32, i32) {
    %c0_i32 = arith.constant 0 : i32
    %c0_i32_0 = arith.constant 0 : i32
    %c0_i32_1 = arith.constant 0 : i32
    return %arg0, %c0_i32, %c0_i32_0 : i32, i32, i32
  }
  func.func @transform_9(%arg0: i32) -> (i32, i32, i32) {
    %c0_i32 = arith.constant 0 : i32
    %c0_i32_0 = arith.constant 0 : i32
    %c0_i32_1 = arith.constant 0 : i32
    return %arg0, %c0_i32, %c0_i32_0 : i32, i32, i32
  }
  func.func @transform_10(%arg0: i32) -> (i32, i32, i32) {
    %c0_i32 = arith.constant 0 : i32
    %c0_i32_0 = arith.constant 0 : i32
    %c0_i32_1 = arith.constant 0 : i32
    return %arg0, %c0_i32, %c0_i32_0 : i32, i32, i32
  }
  func.func @transform_11(%arg0: i32) -> (i32, i32, i32) {
    %c0_i32 = arith.constant 0 : i32
    %c0_i32_0 = arith.constant 0 : i32
    %c0_i32_1 = arith.constant 0 : i32
    return %arg0, %c0_i32, %c0_i32_0 : i32, i32, i32
  }
  func.func @transform_12(%arg0: i32) -> (i32, i32, i32) {
    %c0_i32 = arith.constant 0 : i32
    %c0_i32_0 = arith.constant 0 : i32
    %c0_i32_1 = arith.constant 0 : i32
    return %arg0, %c0_i32, %c0_i32_0 : i32, i32, i32
  }
  func.func @transform_13(%arg0: i32) -> (i32, i32, i32) {
    %c0_i32 = arith.constant 0 : i32
    %c0_i32_0 = arith.constant 0 : i32
    %c0_i32_1 = arith.constant 0 : i32
    return %arg0, %c0_i32, %c0_i32_0 : i32, i32, i32
  }
  func.func @transform_14(%arg0: i32) -> (i32, i32, i32) {
    %c0_i32 = arith.constant 0 : i32
    %c0_i32_0 = arith.constant 0 : i32
    %c0_i32_1 = arith.constant 0 : i32
    return %arg0, %c0_i32, %c0_i32_0 : i32, i32, i32
  }
}

</mosaic_0001>

<bundles_post_ra>
// kernel: tpu_custom_call.1
= control target key start
LH: loop header
LB: loop body
LE: loop exit
PB: predicated region body
PF: predicated region fallthrough
CT: control target
= control target key end

     0   :  { %s4044_s0 = inlined_call_operand.hbm [shape: f32[16,32], index: 0, kind: input, shape index: {}]   ;;  %s4045_s1 = inlined_call_operand.vmem [shape: f32[2,1,8], index: 1, kind: input, shape index: {}]   ;;  %s4046_s2 = inlined_call_operand.vmem [shape: f32[2,32,96], index: 2, kind: input, shape index: {}]   ;;  %s4047_s3 = inlined_call_operand.vmem [shape: f32[2,1,96], index: 3, kind: input, shape index: {}]   ;;  %s4048_s4 = inlined_call_operand.vmem [shape: f32[2,32,32], index: 4, kind: input, shape index: {}]   ;;  %s4049_s5 = inlined_call_operand.vmem [shape: f32[2,1,32], index: 5, kind: input, shape index: {}]   ;;  %s4050_s6 = inlined_call_operand.vmem [shape: f32[2,1,32], index: 6, kind: input, shape index: {}]   ;;  %s4051_s7 = inlined_call_operand.vmem [shape: f32[2,1,32], index: 7, kind: input, shape index: {}]   ;;  %s4052_s8 = inlined_call_operand.vmem [shape: f32[2,32,64], index: 8, kind: input, shape index: {}]   ;;  %s4053_s9 = inlined_call_operand.vmem [shape: f32[2,1,64], index: 9, kind: input, shape index: {}]   ;;  %s4054_s10 = inlined_call_operand.vmem [shape: f32[2,64,32], index: 10, kind: input, shape index: {}]   ;;  %s4055_s11 = inlined_call_operand.vmem [shape: f32[2,1,32], index: 11, kind: input, shape index: {}]   ;;  %s4056_s12 = inlined_call_operand.vmem [shape: f32[2,1,32], index: 12, kind: input, shape index: {}]   ;;  %s4057_s13 = inlined_call_operand.vmem [shape: f32[2,1,32], index: 13, kind: input, shape index: {}]   ;;  %s4058_s14 = inlined_call_operand.hbm [shape: f32[2,16,32], index: 14, kind: output, shape index: {}]  }
   0x1   :  { %4075 = sst [smem:[#allocation18_spill]] %s4044_s0 }
   0x2   :  { %4076 = sst [smem:[#allocation19_spill]] %s4045_s1 }
   0x3   :  { %4077 = sst [smem:[#allocation20_spill]] %s4046_s2 }
   0x4   :  { %4078 = sst [smem:[#allocation21_spill]] %s4048_s4 }
   0x5   :  { %4079 = sst [smem:[#allocation22_spill]] %s4058_s14 }
   0x6   :  { %19 = vsyncpa [#allocation4], 0 }
   0x7   :  { %20 = vsyncpa [#allocation5], 0 }
   0x8   :  { %22 = vsyncpa [#allocation5 + $0x1], 0  ;;  %s3603_s29 = smov 0   ;;  %s3605_s30 = smov 0  }
   0x9   :  { %s3607_s15 = smov 0   ;;  %s3609_s16 = smov 0  }
   0xa LB: > { %4080 = sst [smem:[#allocation9_spill]] %s3495_s29  ;;  %s3624_s17 = sadd.s32 4294967295, %s3507_s16   ;;  %s3507_s16 = sphi %s3609_s16, %s4116_s16   ;;  %s3503_s15 = sphi %s3607_s15, %s4119_s15   ;;  %s3499_s30 = sphi %s3605_s30, %s4118_s30   ;;  %s3495_s29 = sphi %s3603_s29, %s4117_s29  }
   0xb   : > { %4081 = sst [smem:[#allocation10_spill]] %s3499_s30  ;;  %s2979_s18 = sadd.s32 4294967294, %s3507_s16  }
   0xc   : > { %4082 = sst [smem:[#allocation11_spill]] %s3503_s15  ;;  %s3628_s19 = sadd.s32 1, %s3507_s16  }
   0xd   : > { %4083 = sst [smem:[#allocation12_spill]] %s3507_s16  ;;  %s389_s20 = sadd.s32 1, %s3503_s15 }
   0xe   : > { %4084 = sst [smem:[#allocation13_spill]] %s3624_s17  ;;  %s386_s21 = ssub.s32 %s3507_s16, %s3628_s19 }
   0xf   : > { %4085 = sst [smem:[#allocation14_spill]] %s3628_s19  ;;  %p399_p0 = scmp.ne.s32.totalorder %s3503_s15, %s3499_s30 }
  0x10   : > { %p387_p1 = scmp.eq.s32.totalorder %s386_s21, 0  ;;  %p400_p2 = scmp.eq.s32.totalorder %s3624_s17, 1 }
  0x11   : > { %p405_p3 = scmp.ne.s32.totalorder %s3499_s30, %s3495_s29  ;;  %p406_p4 = scmp.eq.s32.totalorder %s2979_s18, 1 }
  0x12   : > { %s3639_s22 = scalar_select %p387_p1, %s3503_s15, %s389_s20  }
  0x13   : > { %p3641_p5 = por %p400_p2, %p399_p0  ;;  %p3645_p6 = por %p406_p4, %p405_p3 }
  0x14   : > { %4086 = sst [smem:[#allocation15_spill]] %s3639_s22  ;;  %p2980_p7 = scmp.ge.s32.totalorder %s3507_s16, 1 }
  0x15   : > { %s4087_s23 = scalar_select %p3641_p5, 1, 0 }
  0x16   : > { %s4089_s24 = scalar_select %p3645_p6, 1, 0 }
  0x17   : > { %4088 = sst [smem:[#allocation16_spill]] %s4087_s23  ;;  %p413_p8 = scmp.lt.s32.totalorder %s3507_s16, 3 }
  0x18   : > { %4090 = sst [smem:[#allocation17_spill]] %s4089_s24  ;;  %p4063_p10 = scmp.eq.s32.totalorder %s3624_s17, 0 }
  0x19   : > { %p3653_p11 = pnand %p2980_p7, %p413_p8  ;;  %s3509_s26 = smov [#allocation3]  }
  0x1a   : > { %s425_s27 = sshll.u32 %s3509_s26, 4  ;;  %s4093_s0 = sld [smem:[#allocation18_spill]]  ;;  %s426_s27 = int_to_ptr.vmem [resolvable:$true] %s425_s27 }
  0x1b   : > { %s4091_s25 = scalar_select %p3653_p11, 1, 0 }
  0x1c   : > { %p3304_p12 = pneg %p3653_p11 }
  0x1e   : > { %p3661_p13 = pnand %p4063_p10, %p3304_p12 }
  0x20   : > { %s3413_s21 = scalar_lea.hbm %s4093_s0, 256  ;;  %p3415_p1 = pneg %p3661_p13 }
  0x21   : > { %p3414_p0 = scmp.ne.s32.totalorder %s4093_s0, %s3413_s21  ;;  %p3420_p4 = scmp.lt.u32.totalorder %s3413_s21, %s4093_s0 }
  0x23   : > { %p3416_p2 = pnand %p3415_p1, %p3414_p0 }
  0x25   : > { %p3417_p3 = pneg %p3416_p2 }
  0x27   : > { %p3422_p7 = pnand %p3420_p4, %p3417_p3 }
  0x29   : > { %3425 = shalt.err (!%p3422_p7)
}
  0x2a   : > { %s3426_s24 = scalar_lea.vmem %s426_s27, 256  ;;  %p3434_p10 = scmp.lt.s32.totalorder %s426_s27, %s426_s27 }
  0x2b   : > { %p3427_p8 = scmp.ne.s32.totalorder %s426_s27, %s3426_s24  ;;  %p3435_p6 = scmp.lt.s32.totalorder %s3426_s24, %s3426_s24 }
  0x2d   : > { %p3429_p12 = pnand %p3427_p8, %p3415_p1  ;;  %p3436_p5 = por %p3435_p6, %p3434_p10 }
  0x2f   : > { %p3430_p9 = pneg %p3429_p12 }
  0x31   : > { %p3437_p11 = pnand %p3436_p5, %p3430_p9 }
  0x33   : > { %3440 = shalt.err (!%p3437_p11)
}
  0x34   : > { %s3510_s15 = smov 128   ;;  %s3511_s22 = smov 8  }
  0x35   : > { %3307 = dma.hbm_to_vmem [thread:$0]  (!%p3661_p13), %s4093_s0, 256, %s426_s27, [#allocation4], %s3510_s15, %s3510_s15, %s3511_s22  }
  0x36   : > { %p4094_p0 = scmp.ne.s32.totalorder %s4091_s25, 0 }
  0x37   : > { %p4095_p2 = scmp.eq.s32.totalorder (!%p4094_p0), %s3624_s17, 0 }
  0x38   : > { %524 = sbr.rel (%p4094_p0) target bundleno = 4042 (0xfca), region = 76 }
  0x3f   : > { %3486 = dma.done.wait (%p4095_p2), [#allocation4], 256   ;;  %p4096_p1 = pmov %p4095_p2 }
  0x40   : > { %s4066_s19 = sand.u32 1, %s3499_s30   ;;  %p609_p5 = scmp.lt.s32.totalorder %s3624_s17, 1 }
  0x41   : > { %3488 = vsyncadd (%p4096_p1), [#allocation4], 4294967040  ;;  %s2985_s24 = sshll.u32 %s4066_s19, 4  ;;  %s4097_s2 = sld [smem:[#allocation20_spill]] }
  0x42   : > { %s3692_s28 = scalar_select %p609_p5, %s3624_s17, 1 }
  0x43   : > { %s4098_s4 = sld [smem:[#allocation21_spill]]  ;;  %s3746_s19 = scalar_lea.vmem [#allocation6], %s2985_s24 }
  0x44   : > { %s3048_s25 = sshll.u32 %s3692_s28, 5  ;;  %s646_s17 = scalar_lea.vmem %s4055_s11, %s3692_s28 }
  0x45   : > { %s3722_s22 = scalar_lea.vmem %s4052_s8, %s3048_s25  ;;  %s649_s26 = scalar_lea.vmem %s4056_s12, %s3692_s28 }
  0x46   : > { %s652_s1 = scalar_lea.vmem %s4057_s13, %s3692_s28  ;;  %s4099_s20 = sld [smem:[#allocation13_spill]] }
  0x47   : > { %s613_s18 = scalar_lea.vmem %s4097_s2, %s3048_s25  ;;  %s638_s2 = scalar_lea.vmem %s4053_s9, %s3692_s28 }
  0x49   : > { %s3705_s0 = scalar_lea.vmem %s4098_s4, %s3048_s25  ;;  %s3051_s4 = sshll.u32 %s3692_s28, 6 }
  0x4a   : > { %s3732_s14 = scalar_lea.vmem %s4054_s10, %s3051_s4 }
  0x4c   : > { %p4100_p6 = scmp.ne.s32.totalorder %s4099_s20, 0 }
  0x4d   : > { %v657_v0 = vld [vmem:[#allocation3] sm:$0xff] (!%p4100_p6)  ;;  %vm659_vm0 = vcmask (!%p4100_p6), 261120   ;;  %v658_v1 = vld [vmem:[#allocation3 + $0x8] sm:$0xff] (!%p4100_p6) }
  0x4e   : > { %656 = sbr.rel (%p4100_p6) target bundleno = 85 (0x55), region = 84  ;;  %660 = vst.msk [vmem:[#allocation2] sm:$0xff] (!%p4100_p6), %vm659_vm0, %v657_v0  ;;  %661 = vst.msk [vmem:[#allocation2 + $0x8] sm:$0xff] (!%p4100_p6), %vm659_vm0, %v658_v1 }
  0x55 PF: > { %v666_v2 = vld [vmem:[%s613_s18] sm:$0xff]  ;;  %v667_v3 = vld [vmem:[%s613_s18 + $0x8] sm:$0xff]  ;;  %v668_v4 = vld [vmem:[%s613_s18 + $0x10] sm:$0xff]  ;;  %vm677_vm1 = vcmask 261120   ;;  %v3512_v10 = vmov 0.0   ;;  %vm3513_vm2 = vmmov 0  }
  0x56   : > { %v3260_v5 = vpack.c.bf16 %v667_v3, %v666_v2  ;;  %v669_v6 = vld [vmem:[%s613_s18 + $0x18] sm:$0xff]  ;;  %v3750_v7 = vld [vmem:[#allocation2] sm:$0xff]  ;;  %v3754_v9 = vld [vmem:[#allocation2 + $0x8] sm:$0xff]  ;;  %3140 = vmatprep.subr.mxu0 %v3512_v10  ;;  %3142 = vmatprep.mubr.msk.f32.mxu0 %vm3513_vm2, %v3512_v10  ;;  %s4101_s18 = scalar_lea.vmem %s4047_s3, %s3692_s28  ;;  %s3514_s21 = smov 96   ;;  %vm778_vm3 = vcmask 64512   ;;  %vm2645_vm6 = vcmask 523264  }
  0x57   : > { %v3264_v8 = vpack.c.bf16 %v669_v6, %v668_v4  ;;  %3127 = vmatprep.mubr.msk.f32.mxu1 %vm677_vm1, %v3750_v7  ;;  %v2995_v11 = vld [vmem:[%s4101_s18] ss:$0 sm:$0xff]  ;;  %s3515_s29 = smov 64   ;;  %s3516_s16 = smov 120  }
  0x58   : > { %3261 = vmatprep.subr.bf16.mxu1 %v3260_v5  ;;  %s4102_s27 = sld [smem:[#allocation19_spill]]  ;;  %s3517_s20 = smov 88  }
  0x59   : > { %3263 = vmatpush3.bf16.msra.mxu1 %v3260_v5  ;;  %s3518_s4 = smov 80   ;;  %s3519_s24 = smov 56  }
  0x5a   : > { %3265 = vmatprep.subr.bf16.mxu1 %v3264_v8  ;;  %s3520_s18 = smov 112   ;;  %s3524_s30 = smov 40  }
  0x5b   : > { %s4107_s23 = sld [smem:[#allocation10_spill]] }
  0x5d   : > { %3267 = vmatpush3.bf16.msra.mxu1 %v3264_v8 }
  0x5e   : > { %3130 = vmatprep.subr.mxu1 %v3512_v10  ;;  %v3793_v19 = vld [vmem:[%s4102_s27] ss:$0 sm:$0xff]  ;;  %v3799_v23 = vld [vmem:[%s4102_s27 + $0x1] ss:$0 sm:$0xff] }
  0x60   : > { %3128 = vmatmul.mubr.msk.f32.vlgmr.msra.gmra.mrb[0].mxu1 %vm677_vm1, %v3754_v9 }
  0x61   : > { %3132 = vmatprep.mubr.msk.f32.mxu1 %vm3513_vm2, %v3512_v10 }
 0x133   : > { %v3129_v12 = vpop.f32.mrb[0].mxu1 }
 0x134   : > { %v750_v13 = vpop.f32.mrb[1].mxu1  ;;  %v3772_v15 = vadd.f32 %v3129_v12, %v2995_v11 }
 0x135   : > { %v3769_v14 = vadd.f32 %v2995_v11, %v750_v13 }
 0x137   : > { %776 = vrot.lane.b32.xlu0 %v3769_v14, %s3514_s21 }
 0x13b   : > { %854 = vrot.lane.b32.xlu0 %v3772_v15, %s3514_s21  ;;  %s3521_s21 = smov 48  }
 0x13f   : > { %1028 = vrot.lane.b32.xlu0 %v3772_v15, %s3515_s29 }
 0x143   : > { %1182 = vrot.lane.b32.xlu0 %v3772_v15, %s3516_s16 }
 0x1a9   : > { %v777_v16 = vpop.permute.xlu0 %776 }
 0x1aa   : > { %3131 = vmatpush3.xpose.msk.msra.mxu1 %vm778_vm3, %v777_v16 }
 0x1ab   : > { %3135 = vmatprep.subr.mxu1 %v3512_v10 }
 0x1ad   : > { %3133 = vmatmul.mubr.msk.f32.vlgmr.msra.gmra.mrb[2].mxu1 %vm778_vm3, %v3769_v14  ;;  %v855_v17 = vpop.permute.xlu0 %854 }
 0x1ae   : > { %3136 = vmatpush3.xpose.msk.msra.mxu1 %vm778_vm3, %v855_v17  ;;  %3137 = vmatprep.mubr.msk.f32.mxu1 %vm3513_vm2, %v3512_v10 }
 0x1af   : > { %3145 = vmatprep.subr.mxu1 %v3512_v10 }
 0x1b1   : > { %3138 = vmatmul.mubr.msk.f32.vlgmr.msra.gmra.mrb[4].mxu1 %vm778_vm3, %v3772_v15  ;;  %v1029_v18 = vpop.permute.xlu0 %1028 }
 0x1b2   : > { %3146 = vmatpush3.msra.mxu1 %v1029_v18  ;;  %3147 = vmatprep.mubr.msk.f32.mxu1 %vm3513_vm2, %v3512_v10 }
 0x1b3   : > { %3155 = vmatprep.subr.mxu1 %v3512_v10 }
 0x1b5   : > { %v1183_v29 = vpop.permute.xlu0 %1182 }
 0x280   : > { %v849_v20 = vpop.f32.mrb[2].mxu1 }
 0x281   : > { %v850_v21 = vadd.f32 %v3793_v19, %v849_v20  ;;  %v3134_v22 = vpop.f32.mrb[3].mxu1 }
 0x283   : > { %v930_v24 = vsel %vm778_vm3, %v850_v21, -inf }
 0x284   : > { %931 = vmax.xlane.f32.xlu0 %v930_v24  ;;  %v926_v25 = vpop.f32.mrb[4].mxu1 }
 0x285   : > { %v927_v26 = vadd.f32 %v3799_v23, %v926_v25  ;;  %v3139_v27 = vpop.f32.mrb[5].mxu1 }
 0x286   : > { %v760_v27 = vld [vmem:[%s3705_s0 + $0x8] sm:$0xff] }
 0x287   : > { %v933_v28 = vsel %vm778_vm3, %v927_v26, -inf }
 0x288   : > { %934 = vmax.xlane.f32.xlu1 %v933_v28  ;;  %v759_v28 = vld [vmem:[%s3705_s0] sm:$0xff] }
 0x29a   : > { %952 = vrot.lane.b32.xlu0 %v3769_v14, %s3515_s29  ;;  %s3522_s29 = smov 72  }
 0x29e   : > { %1104 = vrot.lane.b32.xlu0 %v3769_v14, %s3516_s16  ;;  %s3523_s16 = smov 104  }
 0x311   : > { %v932_v30 = vpop.xlane.xlu0 %931 }
 0x312   : > { %v936_v37 = vsub.f32 %v850_v21, %v932_v30 }
 0x314   : > { %v938_v38 = vmul.f32 1.442695, %v936_v37 }
 0x315   : > { %v935_v31 = vpop.xlane.xlu1 %934  ;;  %v953_v32 = vpop.permute.xlu0 %952 }
 0x316   : > { %v937_v33 = vsub.f32 %v927_v26, %v935_v31  ;;  %3141 = vmatpush3.msra.mxu0 %v953_v32 }
 0x317   : > { %3150 = vmatprep.subr.mxu0 %v3512_v10 }
 0x318   : > { %v940_v34 = vmul.f32 1.442695, %v937_v33 }
 0x319   : > { %v1105_v49 = vpop.permute.xlu0 %1104 }
 0x31a   : > { %3365 = vpow2.f32 %v940_v34 }
 0x31b   : > { %3367 = vpow2.f32 %v938_v38 }
 0x324   : > { %v3366_v35 = vpop.eup %3365 }
 0x325   : > { %v945_v36 = vsel %vm778_vm3, %v3366_v35, 0.0  ;;  %v3368_v39 = vpop.eup %3367 }
 0x326   : > { %946 = vadd.xlane.f32.xlu1 %v945_v36  ;;  %v942_v40 = vsel %vm778_vm3, %v3368_v39, 0.0 }
 0x337   : > { %1184 = vrot.lane.b32.xlu1 %v3772_v15, %s3517_s20 }
 0x35b   : > { %943 = vadd.xlane.f32.xlu1 %v942_v40 }
 0x36c   : > { %1106 = vrot.lane.b32.xlu1 %v3769_v14, %s3517_s20  ;;  %s4104_s20 = scalar_lea.vmem %s4050_s6, %s3692_s28 }
 0x370   : > { %1598 = vrot.lane.b32.xlu1 %v3769_v14, %s3518_s4 }
 0x3b3   : > { %v947_v41 = vpop.xlane.xlu1 %946 }
 0x3b4   : > { %3369 = vrcp.f32 %v947_v41 }
 0x3b7   : > { %v1185_v44 = vpop.permute.xlu1 %1184 }
 0x3be   : > { %v3370_v42 = vpop.eup %3369 }
 0x3bf   : > { %v951_v43 = vmul.f32 %v3370_v42, %v3366_v35 }
 0x3c1   : > { %3148 = vmatmul.mubr.msk.f32.vlgmr.msra.gmra.mrb[6].mxu1 %vm778_vm3, %v951_v43 }
 0x3c2   : > { %3156 = vmatpush3.xpose.msk.msra.mxu1 %vm778_vm3, %v1185_v44  ;;  %3157 = vmatprep.mubr.msk.f32.mxu1 %vm3513_vm2, %v3512_v10 }
 0x3c3   : > { %3165 = vmatprep.subr.mxu1 %v3512_v10 }
 0x3c5   : > { %3158 = vmatmul.mubr.msk.f32.vlgmr.msra.gmra.mrb[8].mxu1 %vm778_vm3, %v1183_v29 }
 0x3c6   : > { %3167 = vmatprep.mubr.msk.f32.mxu1 %vm3513_vm2, %v3512_v10 }
 0x3e8   : > { %v944_v45 = vpop.xlane.xlu1 %943 }
 0x3e9   : > { %3371 = vrcp.f32 %v944_v45 }
 0x3ec   : > { %v1107_v48 = vpop.permute.xlu1 %1106 }
 0x3f0   : > { %v1599_v17 = vpop.permute.xlu1 %1598 }
 0x3f3   : > { %v3372_v46 = vpop.eup %3371 }
 0x3f4   : > { %v950_v47 = vmul.f32 %v3372_v46, %v3368_v39 }
 0x3f6   : > { %3143 = vmatmul.mubr.msk.f32.vlgmr.msra.gmra.mrb[0].mxu0 %vm778_vm3, %v950_v47 }
 0x3f7   : > { %3151 = vmatpush3.xpose.msk.msra.mxu0 %vm778_vm3, %v1107_v48  ;;  %3152 = vmatprep.mubr.msk.f32.mxu0 %vm3513_vm2, %v3512_v10 }
 0x3f8   : > { %3160 = vmatprep.subr.mxu0 %v3512_v10 }
 0x3fa   : > { %3153 = vmatmul.mubr.msk.f32.vlgmr.msra.gmra.mrb[2].mxu0 %vm778_vm3, %v1105_v49 }
 0x3fb   : > { %3162 = vmatprep.mubr.msk.f32.mxu0 %vm3513_vm2, %v3512_v10 }
 0x494   : > { %v3829_v50 = vpop.f32.mrb[6].mxu1 }
 0x495   : > { %v3149_v51 = vpop.f32.mrb[7].mxu1 }
 0x498   : > { %v1256_v52 = vpop.f32.mrb[8].mxu1 }
 0x499   : > { %v1257_v53 = vadd.f32 %v3799_v23, %v1256_v52  ;;  %v3159_v54 = vpop.f32.mrb[9].mxu1  ;;  %v761_v52 = vld [vmem:[%s3705_s0 + $0x10] sm:$0xff] }
 0x49b   : > { %v1263_v55 = vsel %vm778_vm3, %v1257_v53, -inf }
 0x49c   : > { %1264 = vmax.xlane.f32.xlu0 %v1263_v55 }
 0x4b2   : > { %1358 = vrot.lane.b32.xlu0 %v3772_v15, %s3519_s24 }
 0x4b6   : > { %1596 = vrot.lane.b32.xlu0 %v3769_v14, %s3520_s18 }
 0x4ba   : > { %1676 = vrot.lane.b32.xlu0 %v3772_v15, %s3518_s4 }
 0x4c9   : > { %v3837_v56 = vpop.f32.mrb[0].mxu0 }
 0x4ca   : > { %v3144_v57 = vpop.f32.mrb[1].mxu0 }
 0x4cd   : > { %v1178_v58 = vpop.f32.mrb[2].mxu0 }
 0x4ce   : > { %v3154_v59 = vpop.f32.mrb[3].mxu0  ;;  %v1179_v60 = vadd.f32 %v3793_v19, %v1178_v58 }
 0x4d0   : > { %v1260_v61 = vsel %vm778_vm3, %v1179_v60, -inf }
 0x4d9   : > { %1261 = vmax.xlane.f32.xlu0 %v1260_v61 }
 0x4ef   : > { %1282 = vrot.lane.b32.xlu0 %v3769_v14, %s3519_s24 }
 0x4f3   : > { %1774 = vrot.lane.b32.xlu0 %v3769_v14, %s3521_s21 }
 0x4f7   : > { %2011 = vrot.lane.b32.xlu0 %v3769_v14, %s3522_s29 }
 0x4fb   : > { %2089 = vrot.lane.b32.xlu0 %v3772_v15, %s3522_s29  ;;  %s3525_s29 = smov [#allocation6]  }
 0x4ff   : > { %2009 = vrot.lane.b32.xlu0 %v3769_v14, %s3523_s16 }
 0x503   : > { %2087 = vrot.lane.b32.xlu0 %v3772_v15, %s3523_s16 }
 0x529   : > { %v1265_v62 = vpop.xlane.xlu0 %1264 }
 0x52a   : > { %v1267_v63 = vsub.f32 %v1257_v53, %v1265_v62 }
 0x52c   : > { %v1270_v0 = vmul.f32 1.442695, %v1267_v63 }
 0x52d   : > { %v1359_v1 = vpop.permute.xlu0 %1358 }
 0x52e   : > { %3373 = vpow2.f32 %v1270_v0  ;;  %3166 = vmatpush3.msra.mxu1 %v1359_v1 }
 0x52f   : > { %3180 = vmatprep.subr.mxu1 %v3512_v10 }
 0x531   : > { %v1597_v4 = vpop.permute.xlu0 %1596 }
 0x535   : > { %v1677_v5 = vpop.permute.xlu0 %1676 }
 0x538   : > { %v3374_v2 = vpop.eup %3373 }
 0x539   : > { %v1275_v3 = vsel %vm778_vm3, %v3374_v2, 0.0 }
 0x53a   : > { %1276 = vadd.xlane.f32.xlu1 %v1275_v3 }
 0x54b   : > { %1674 = vrot.lane.b32.xlu1 %v3772_v15, %s3520_s18  ;;  %s4105_s18 = scalar_lea.vmem %s4051_s7, %s3692_s28 }
 0x566   : > { %v1262_v6 = vpop.xlane.xlu0 %1261 }
 0x567   : > { %v1266_v8 = vsub.f32 %v1179_v60, %v1262_v6 }
 0x569   : > { %v1268_v11 = vmul.f32 1.442695, %v1266_v8 }
 0x56a   : > { %v1283_v12 = vpop.permute.xlu0 %1282 }
 0x56b   : > { %3375 = vpow2.f32 %v1268_v11  ;;  %3161 = vmatpush3.msra.mxu0 %v1283_v12 }
 0x56c   : > { %3170 = vmatprep.subr.mxu0 %v760_v27 }
 0x56e   : > { %v1775_v41 = vpop.permute.xlu0 %1774 }
 0x575   : > { %v3376_v13 = vpop.eup %3375 }
 0x576   : > { %v1272_v16 = vsel %vm778_vm3, %v3376_v13, 0.0 }
 0x577   : > { %1273 = vadd.xlane.f32.xlu1 %v1272_v16 }
 0x5c7   : > { %v1277_v18 = vpop.xlane.xlu1 %1276 }
 0x5c8   : > { %3377 = vrcp.f32 %v1277_v18 }
 0x5cb   : > { %v1675_v22 = vpop.permute.xlu1 %1674 }
 0x5d2   : > { %v3378_v20 = vpop.eup %3377 }
 0x5d3   : > { %v1281_v21 = vmul.f32 %v3378_v20, %v3374_v2 }
 0x5d5   : > { %3168 = vmatmul.mubr.msk.f32.vlgmr.msra.gmra.mrb[10].mxu1 %vm778_vm3, %v1281_v21 }
 0x5d6   : > { %3181 = vmatpush3.xpose.msk.msra.mxu1 %vm778_vm3, %v1599_v17  ;;  %3182 = vmatprep.mubr.msk.f32.mxu1 %vm3513_vm2, %v3512_v10 }
 0x5d7   : > { %3185 = vmatprep.subr.mxu1 %v3512_v10 }
 0x5d9   : > { %3183 = vmatmul.mubr.msk.f32.vlgmr.msra.gmra.mrb[12].mxu1 %vm778_vm3, %v1597_v4 }
 0x5da   : > { %3186 = vmatpush3.xpose.msk.msra.mxu1 %vm778_vm3, %v1677_v5  ;;  %3187 = vmatprep.mubr.msk.f32.mxu1 %vm3513_vm2, %v3512_v10 }
 0x5db   : > { %3195 = vmatprep.subr.mxu1 %v3512_v10 }
 0x5dd   : > { %3188 = vmatmul.mubr.msk.f32.vlgmr.msra.gmra.mrb[14].mxu1 %vm778_vm3, %v1675_v22 }
 0x5de   : > { %3197 = vmatprep.mubr.msk.f32.mxu1 %vm3513_vm2, %v3512_v10 }
 0x604   : > { %v1274_v24 = vpop.xlane.xlu1 %1273 }
 0x605   : > { %3379 = vrcp.f32 %v1274_v24 }
 0x60f   : > { %v3380_v25 = vpop.eup %3379 }
 0x610   : > { %v1280_v26 = vmul.f32 %v3380_v25, %v3376_v13 }
 0x612   : > { %3163 = vmatmul.mubr.msk.f32.vlgmr.msra.gmra.mrb[4].mxu0 %vm778_vm3, %v1280_v26 }
 0x613   : > { %3171 = vmatpush3.msra.mxu0 %v760_v27 }
 0x614   : > { %3175 = vmatprep.subr.mxu0 %v759_v28 }
 0x6a8   : > { %v1430_v29 = vpop.f32.mrb[10].mxu1 }
 0x6a9   : > { %v3169_v30 = vpop.f32.mrb[11].mxu1 }
 0x6aa   : > { %v762_v30 = vld [vmem:[%s3705_s0 + $0x18] sm:$0xff]  ;;  %s4103_s0 = scalar_lea.vmem %s4049_s5, %s3692_s28 }
 0x6ac   : > { %v1670_v31 = vpop.f32.mrb[12].mxu1 }
 0x6ad   : > { %v1671_v32 = vadd.f32 %v3793_v19, %v1670_v31  ;;  %v3184_v33 = vpop.f32.mrb[13].mxu1 }
 0x6af   : > { %v1752_v34 = vsel %vm778_vm3, %v1671_v32, -inf }
 0x6b0   : > { %v1748_v35 = vpop.f32.mrb[14].mxu1  ;;  %1753 = vmax.xlane.f32.xlu1 %v1752_v34 }
 0x6b1   : > { %v1749_v36 = vadd.f32 %v3799_v23, %v1748_v35  ;;  %v3189_v37 = vpop.f32.mrb[15].mxu1 }
 0x6b3   : > { %v1755_v38 = vsel %vm778_vm3, %v1749_v36, -inf }
 0x6b4   : > { %1756 = vmax.xlane.f32.xlu1 %v1755_v38 }
 0x6e5   : > { %v1354_v39 = vpop.f32.mrb[4].mxu0 }
 0x6e6   : > { %v3164_v40 = vpop.f32.mrb[5].mxu0  ;;  %3172 = vmatprep.mubr.msk.f32.mxu0 %vm778_vm3, %v1354_v39 }
 0x6e7   : > { %3173 = vmatmul.mubr.msk.f32.vlgmr.msra.gmra.mrb[6].mxu0 %vm778_vm3, %v1430_v29 }
 0x6e8   : > { %3177 = vmatprep.mubr.msk.f32.mxu0 %vm778_vm3, %v3837_v56  ;;  %3176 = vmatpush3.msra.mxu0 %v759_v28  ;;  %v2012_v56 = vpop.permute.xlu0 %2011 }
 0x6e9   : > { %3190 = vmatprep.subr.mxu0 %v3512_v10 }
 0x6ec   : > { %v2090_v60 = vpop.permute.xlu0 %2089 }
 0x6ef   : > { %3178 = vmatmul.mubr.msk.f32.vlgmr.msra.gmra.mrb[6].mxu0 %vm778_vm3, %v3829_v50 }
 0x6f0   : > { %3191 = vmatpush3.msra.mxu0 %v1775_v41  ;;  %3192 = vmatprep.mubr.msk.f32.mxu0 %vm3513_vm2, %v3512_v10  ;;  %v2010_v62 = vpop.permute.xlu0 %2009 }
 0x6f1   : > { %3200 = vmatprep.subr.mxu0 %v761_v52 }
 0x6f4   : > { %v2088_v3 = vpop.permute.xlu0 %2087 }
 0x73d   : > { %v1754_v42 = vpop.xlane.xlu1 %1753 }
 0x73e   : > { %v1758_v43 = vsub.f32 %v1671_v32, %v1754_v42 }
 0x740   : > { %v1760_v44 = vmul.f32 1.442695, %v1758_v43 }
 0x741   : > { %v1757_v45 = vpop.xlane.xlu1 %1756 }
 0x742   : > { %3381 = vpow2.f32 %v1760_v44  ;;  %v1759_v46 = vsub.f32 %v1749_v36, %v1757_v45 }
 0x744   : > { %v1762_v47 = vmul.f32 1.442695, %v1759_v46 }
 0x746   : > { %3383 = vpow2.f32 %v1762_v47 }
 0x74c   : > { %v3382_v48 = vpop.eup %3381 }
 0x74d   : > { %v1764_v49 = vsel %vm778_vm3, %v3382_v48, 0.0 }
 0x74e   : > { %1765 = vadd.xlane.f32.xlu1 %v1764_v49 }
 0x750   : > { %v3384_v51 = vpop.eup %3383 }
 0x751   : > { %v1767_v50 = vsel %vm778_vm3, %v3384_v51, 0.0 }
 0x752   : > { %1768 = vadd.xlane.f32.xlu1 %v1767_v50  ;;  %v2485_v50 = vld [vmem:[%s3722_s22 + $0x8] sm:$0xff] }
 0x763   : > { %1850 = vrot.lane.b32.xlu1 %v3772_v15, %s3521_s21 }
 0x7db   : > { %v1766_v53 = vpop.xlane.xlu1 %1765 }
 0x7dc   : > { %3385 = vrcp.f32 %v1766_v53  ;;  %v2487_v53 = vld [vmem:[%s3722_s22 + $0x18] sm:$0xff] }
 0x7df   : > { %v1769_v54 = vpop.xlane.xlu1 %1768 }
 0x7e0   : > { %3387 = vrcp.f32 %v1769_v54 }
 0x7e3   : > { %v1851_v55 = vpop.permute.xlu1 %1850 }
 0x7e4   : > { %3196 = vmatpush3.msra.mxu1 %v1851_v55 }
 0x7e5   : > { %3205 = vmatprep.subr.mxu1 %v3512_v10 }
 0x7e6   : > { %v3386_v57 = vpop.eup %3385 }
 0x7e7   : > { %v1772_v58 = vmul.f32 %v3386_v57, %v3382_v48 }
 0x7e9   : > { %3193 = vmatmul.mubr.msk.f32.vlgmr.msra.gmra.mrb[8].mxu0 %vm778_vm3, %v1772_v58 }
 0x7ea   : > { %v3388_v59 = vpop.eup %3387  ;;  %3201 = vmatpush3.msra.mxu0 %v761_v52 }
 0x7eb   : > { %v1773_v61 = vmul.f32 %v3388_v59, %v3384_v51  ;;  %3210 = vmatprep.subr.mxu0 %v3512_v10  ;;  %v2484_v51 = vld [vmem:[%s3722_s22] sm:$0xff] }
 0x7ec   : > { %v3268_v52 = vpack.c.bf16 %v2485_v50, %v2484_v51 }
 0x7ed   : > { %3198 = vmatmul.mubr.msk.f32.vlgmr.msra.gmra.mrb[16].mxu1 %vm778_vm3, %v1773_v61 }
 0x7ee   : > { %3206 = vmatpush3.xpose.msk.msra.mxu1 %vm778_vm3, %v2012_v56  ;;  %3207 = vmatprep.mubr.msk.f32.mxu1 %vm3513_vm2, %v3512_v10 }
 0x7ef   : > { %3215 = vmatprep.subr.mxu1 %v3512_v10 }
 0x7f1   : > { %3208 = vmatmul.mubr.msk.f32.vlgmr.msra.gmra.mrb[18].mxu1 %vm778_vm3, %v2010_v62 }
 0x7f2   : > { %3217 = vmatprep.mubr.msk.f32.mxu1 %vm3513_vm2, %v3512_v10 }
 0x8bc   : > { %v1846_v63 = vpop.f32.mrb[8].mxu0 }
 0x8bd   : > { %v3194_v0 = vpop.f32.mrb[9].mxu0  ;;  %3202 = vmatprep.mubr.msk.f32.mxu0 %vm778_vm3, %v1846_v63 }
 0x8c0   : > { %v1922_v1 = vpop.f32.mrb[16].mxu1 }
 0x8c1   : > { %v3199_v2 = vpop.f32.mrb[17].mxu1  ;;  %3203 = vmatmul.mubr.msk.f32.vlgmr.msra.gmra.mrb[6].mxu0 %vm778_vm3, %v1922_v1 }
 0x8c2   : > { %3211 = vmatpush3.xpose.msk.msra.mxu0 %vm778_vm3, %v2090_v60  ;;  %3212 = vmatprep.mubr.msk.f32.mxu0 %vm3513_vm2, %v3512_v10 }
 0x8c3   : > { %3220 = vmatprep.subr.mxu0 %v3512_v10 }
 0x8c4   : > { %v2083_v4 = vpop.f32.mrb[18].mxu1 }
 0x8c5   : > { %v2084_v5 = vadd.f32 %v3793_v19, %v2083_v4  ;;  %v3209_v6 = vpop.f32.mrb[19].mxu1  ;;  %3213 = vmatmul.mubr.msk.f32.vlgmr.msra.gmra.mrb[10].mxu0 %vm778_vm3, %v2088_v3 }
 0x8c6   : > { %3222 = vmatprep.mubr.msk.f32.mxu0 %vm3513_vm2, %v3512_v10 }
 0x8c7   : > { %v2165_v8 = vsel %vm778_vm3, %v2084_v5, -inf }
 0x8c8   : > { %2166 = vmax.xlane.f32.xlu1 %v2165_v8 }
 0x955   : > { %v2167_v11 = vpop.xlane.xlu1 %2166 }
 0x956   : > { %v2171_v12 = vsub.f32 %v2084_v5, %v2167_v11 }
 0x958   : > { %v2173_v13 = vmul.f32 1.442695, %v2171_v12  ;;  %v3033_v12 = vld [vmem:[%s4104_s20] ss:$0 sm:$0xff]  ;;  %s2797_s20 = sshll.u32 %s3746_s19, 4  ;;  %s3993_s20 = int_to_ptr.vmem [resolvable:$true] %s2797_s20 }
 0x959   : > { %s3441_s21 = scalar_lea.vmem %s3993_s20, 256 }
 0x95a   : > { %3389 = vpow2.f32 %v2173_v13  ;;  %p3442_p9 = scmp.ne.s32.totalorder %s3993_s20, %s3441_s21 }
 0x964   : > { %v3390_v19 = vpop.eup %3389 }
 0x965   : > { %v2177_v21 = vsel %vm778_vm3, %v3390_v19, 0.0 }
 0x998   : > { %v2161_v16 = vpop.f32.mrb[10].mxu0 }
 0x999   : > { %v2162_v17 = vadd.f32 %v3799_v23, %v2161_v16  ;;  %v3214_v18 = vpop.f32.mrb[11].mxu0 }
 0x99b   : > { %v2168_v20 = vsel %vm778_vm3, %v2162_v17, -inf }
 0x99c   : > { %2169 = vmax.xlane.f32.xlu0 %v2168_v20 }
 0x9a0   : > { %2178 = vadd.xlane.f32.xlu0 %v2177_v21 }
 0x9b6   : > { %2187 = vrot.lane.b32.xlu0 %v3769_v14, %s3524_s30 }
 0xa29   : > { %v2170_v10 = vpop.xlane.xlu0 %2169 }
 0xa2a   : > { %v2172_v22 = vsub.f32 %v2162_v17, %v2170_v10  ;;  %v3034_v17 = vld [vmem:[%s4105_s18] ss:$0 sm:$0xff]  ;;  %s4109_s18 = sld [smem:[#allocation22_spill]] }
 0xa2c   : > { %v2175_v24 = vmul.f32 1.442695, %v2172_v22  ;;  %v2630_v22 = vld [vmem:[%s3732_s14] sm:$0xff] }
 0xa2d   : > { %v2179_v25 = vpop.xlane.xlu0 %2178 }
 0xa2e   : > { %3391 = vpow2.f32 %v2175_v24  ;;  %v2631_v24 = vld [vmem:[%s3732_s14 + $0x8] sm:$0xff] }
 0xa2f   : > { %3393 = vrcp.f32 %v2179_v25  ;;  %v3276_v25 = vpack.c.bf16 %v2631_v24, %v2630_v22 }
 0xa31   : > { %v2188_v26 = vpop.permute.xlu0 %2187 }
 0xa32   : > { %3216 = vmatpush3.msra.mxu1 %v2188_v26  ;;  %v2632_v26 = vld [vmem:[%s3732_s14 + $0x10] sm:$0xff] }
 0xa33   : > { %3269 = vmatprep.subr.bf16.mxu1 %v3268_v52 }
 0xa38   : > { %v3392_v23 = vpop.eup %3391 }
 0xa39   : > { %v3394_v27 = vpop.eup %3393  ;;  %v2180_v28 = vsel %vm778_vm3, %v3392_v23, 0.0 }
 0xa3a   : > { %v2185_v29 = vmul.f32 %v3394_v27, %v3390_v19  ;;  %2181 = vadd.xlane.f32.xlu1 %v2180_v28  ;;  %v2634_v28 = vld [vmem:[%s3732_s14 + $0x20] sm:$0xff] }
 0xa3c   : > { %3218 = vmatmul.mubr.msk.f32.vlgmr.msra.gmra.mrb[20].mxu1 %vm778_vm3, %v2185_v29  ;;  %v2635_v29 = vld [vmem:[%s3732_s14 + $0x28] sm:$0xff] }
 0xa3d   : > { %3271 = vmatpush3.bf16.msra.mxu1 %v3268_v52 }
 0xa4b   : > { %2263 = vrot.lane.b32.xlu1 %v3772_v15, %s3524_s30  ;;  %v3032_v15 = vld [vmem:[%s4103_s0] ss:$0 sm:$0xff] }
 0xac7   : > { %v2182_v14 = vpop.xlane.xlu1 %2181 }
 0xac8   : > { %3395 = vrcp.f32 %v2182_v14  ;;  %v3284_v14 = vpack.c.bf16 %v2635_v29, %v2634_v28 }
 0xacb   : > { %v2264_v31 = vpop.permute.xlu1 %2263 }
 0xacc   : > { %3221 = vmatpush3.msra.mxu0 %v2264_v31  ;;  %v2637_v31 = vld [vmem:[%s3732_s14 + $0x38] sm:$0xff] }
 0xacd   : > { %3225 = vmatprep.subr.mxu0 %v762_v30 }
 0xad2   : > { %v3396_v32 = vpop.eup %3395 }
 0xad3   : > { %v2186_v33 = vmul.f32 %v3396_v32, %v3392_v23  ;;  %v2633_v23 = vld [vmem:[%s3732_s14 + $0x18] sm:$0xff] }
 0xad4   : > { %v3280_v27 = vpack.c.bf16 %v2633_v23, %v2632_v26 }
 0xad5   : > { %3223 = vmatmul.mubr.msk.f32.vlgmr.msra.gmra.mrb[12].mxu0 %vm778_vm3, %v2186_v33  ;;  %v3035_v33 = vld [vmem:[%s638_s2] ss:$0 sm:$0xff]  ;;  %s3445_s2 = sshll.u32 %s3525_s29, 4  ;;  %s3446_s2 = int_to_ptr.vmem [resolvable:$false] %s3445_s2 }
 0xad6   : > { %3226 = vmatpush3.msra.mxu0 %v762_v30  ;;  %v2636_v30 = vld [vmem:[%s3732_s14 + $0x30] sm:$0xff]  ;;  %s3447_s14 = scalar_lea.vmem %s3446_s2, 512  ;;  %p3448_p3 = scmp.lt.s32.totalorder %s3993_s20, %s3446_s2 }
 0xad7   : > { %3277 = vmatprep.subr.bf16.mxu0 %v3276_v25  ;;  %v3288_v32 = vpack.c.bf16 %v2637_v31, %v2636_v30  ;;  %p3449_p4 = scmp.lt.s32.totalorder %s3447_s14, %s3441_s21 }
 0xad9   : > { %p3450_p7 = por %p3449_p4, %p3448_p3 }
 0xb0f   : > { %v2259_v34 = vpop.f32.mrb[20].mxu1 }
 0xb10   : > { %v3219_v35 = vpop.f32.mrb[21].mxu1  ;;  %3227 = vmatprep.mubr.msk.f32.mxu0 %vm778_vm3, %v2259_v34 }
 0xba8   : > { %v2335_v36 = vpop.f32.mrb[12].mxu0 }
 0xba9   : > { %v3224_v37 = vpop.f32.mrb[13].mxu0  ;;  %3228 = vmatmul.mubr.msk.f32.vlgmr.msra.gmra.mrb[6].mxu0 %vm778_vm3, %v2335_v36 }
 0xbaa   : > { %3279 = vmatpush3.bf16.msra.mxu0 %v3276_v25 }
 0xbab   : > { %3281 = vmatprep.subr.bf16.mxu0 %v3280_v27 }
 0xbae   : > { %3283 = vmatpush3.bf16.msra.mxu0 %v3280_v27  ;;  %v3038_v27 = vld [vmem:[%s646_s17] ss:$0 sm:$0xff]  ;;  %s4106_s17 = sld [smem:[#allocation13_spill]] }
 0xbaf   : > { %3285 = vmatprep.subr.bf16.mxu0 %v3284_v14 }
 0xbb2   : > { %3287 = vmatpush3.bf16.msra.mxu0 %v3284_v14 }
 0xbb3   : > { %3289 = vmatprep.subr.bf16.mxu0 %v3288_v32 }
 0xbb4   : > { %s3052_s15 = sshll.u32 %s4106_s17, 8 }
 0xbb6   : > { %3291 = vmatpush3.bf16.msra.mxu0 %v3288_v32 }
 0xc7c   : > { %v3229_v38 = vpop.f32.mrb[6].mxu0 }
 0xc7d   : > { %v2430_v39 = vadd.f32 %v3229_v38, %v3032_v15  ;;  %v2411_v40 = vpop.f32.mrb[7].mxu0 }
 0xc7e   : > { %v2429_v41 = vadd.f32 %v3032_v15, %v2411_v40 }
 0xc7f   : > { %v2432_v42 = vadd.f32 %v2430_v39, %v3754_v9  ;;  %v2486_v9 = vld [vmem:[%s3722_s22 + $0x10] sm:$0xff]  ;;  %s4108_s22 = sld [smem:[#allocation16_spill]] }
 0xc80   : > { %v2431_v43 = vadd.f32 %v2429_v41, %v3750_v7  ;;  %v3272_v7 = vpack.c.bf16 %v2487_v53, %v2486_v9 }
 0xc81   : > { %v2438_v44 = vsel %vm677_vm1, %v2432_v42, 0.0  ;;  %v2445_v47 = vmul.f32 %v2432_v42, %v2432_v42 }
 0xc82   : > { %2439 = vadd.xlane.f32.xlu0 %v2438_v44  ;;  %v2435_v45 = vsel %vm677_vm1, %v2431_v43, 0.0  ;;  %v2444_v46 = vmul.f32 %v2431_v43, %v2431_v43  ;;  %3273 = vmatprep.subr.bf16.mxu1 %v3272_v7 }
 0xc83   : > { %2436 = vadd.xlane.f32.xlu1 %v2435_v45  ;;  %v2449_v49 = vsel %vm677_vm1, %v2445_v47, 0.0  ;;  %3275 = vmatpush3.bf16.msra.mxu1 %v3272_v7 }
 0xc84   : > { %v2446_v48 = vsel %vm677_vm1, %v2444_v46, 0.0 }
 0xc85   : > { %p4111_p10 = scmp.ne.s32.totalorder %s4108_s22, 0 }
 0xc86   : > { %2447 = vadd.xlane.f32.xlu0 %v2446_v48 }
 0xc87   : > { %2450 = vadd.xlane.f32.xlu1 %v2449_v49  ;;  %p3443_p11 = pnand %p3442_p9, %p4111_p10 }
 0xc89   : > { %p3444_p13 = pneg %p3443_p11 }
 0xc8b   : > { %p3451_p8 = pnand %p3450_p7, %p3444_p13 }
 0xd0f   : > { %v2440_v54 = vpop.xlane.xlu0 %2439 }
 0xd10   : > { %v2437_v55 = vpop.xlane.xlu1 %2436  ;;  %v2443_v56 = vmul.f32 0.03125, %v2440_v54 }
 0xd11   : > { %v2442_v57 = vmul.f32 0.03125, %v2437_v55 }
 0xd12   : > { %v2455_v62 = vmul.f32 %v2443_v56, %v2443_v56  ;;  %v2465_v11 = vsub.f32 %v2432_v42, %v2443_v56 }
 0xd13   : > { %v2454_v58 = vmul.f32 %v2442_v57, %v2442_v57  ;;  %v2448_v59 = vpop.xlane.xlu0 %2447  ;;  %v2464_v6 = vsub.f32 %v2431_v43, %v2442_v57 }
 0xd14   : > { %v2452_v60 = vmul.f32 0.03125, %v2448_v59  ;;  %v2451_v61 = vpop.xlane.xlu1 %2450 }
 0xd15   : > { %v2453_v63 = vmul.f32 0.03125, %v2451_v61 }
 0xd16   : > { %v2456_v0 = vsub.f32 %v2452_v60, %v2454_v58 }
 0xd17   : > { %v2457_v1 = vsub.f32 %v2453_v63, %v2455_v62 }
 0xd18   : > { %v2458_v2 = vmax.f32 %v2456_v0, 0.0 }
 0xd19   : > { %v2459_v3 = vmax.f32 %v2457_v1, 0.0 }
 0xd1a   : > { %v2460_v4 = vadd.f32 1e-12, %v2458_v2 }
 0xd1b   : > { %v2461_v5 = vadd.f32 1e-12, %v2459_v3 }
 0xd1c   : > { %3397 = vrsqrt.f32 %v2460_v4 }
 0xd1d   : > { %3399 = vrsqrt.f32 %v2461_v5 }
 0xd26   : > { %v3398_v8 = vpop.eup %3397 }
 0xd27   : > { %v3400_v13 = vpop.eup %3399  ;;  %v2466_v16 = vmul.f32 %v3398_v8, %v2464_v6 }
 0xd28   : > { %v2467_v18 = vmul.f32 %v3400_v13, %v2465_v11 }
 0xd29   : > { %v2474_v20 = vmul.f32 %v3033_v12, %v2466_v16 }
 0xd2a   : > { %v2475_v19 = vmul.f32 %v3033_v12, %v2467_v18 }
 0xd2b   : > { %v3944_v21 = vadd.f32 %v3034_v17, %v2474_v20 }
 0xd2c   : > { %v3946_v10 = vadd.f32 %v3034_v17, %v2475_v19 }
 0xd2d   : > { %3238 = vmatprep.mubr.msk.f32.mxu1 %vm677_vm1, %v3944_v21 }
 0xd2e   : > { %3239 = vmatmul.mubr.msk.f32.vlgmr.msra.gmra.mrb[22].mxu1 %vm677_vm1, %v3946_v10 }
 0xe01   : > { %v3240_v34 = vpop.f32.mrb[22].mxu1 }
 0xe02   : > { %v2573_v35 = vadd.f32 %v3240_v34, %v3035_v33  ;;  %v2567_v36 = vpop.f32.mrb[23].mxu1 }
 0xe03   : > { %v2568_v37 = vadd.f32 %v3035_v33, %v2567_v36 }
 0xe04   : > { %v2579_v15 = vmul.f32 0.70710677, %v2573_v35  ;;  %v2577_v25 = vmul.f32 0.5, %v2573_v35 }
 0xe05   : > { %v2578_v38 = vmul.f32 0.70710677, %v2568_v37  ;;  %v2576_v22 = vmul.f32 0.5, %v2568_v37 }
 0xe06   : > { %v2581_v39 = vand.u32 2147483647, %v2579_v15  ;;  %vm2621_vm4 = vcmp.lt.f32.partialorder %v2579_v15, 0.0 }
 0xe07   : > { %v2580_v40 = vand.u32 2147483647, %v2578_v38  ;;  %vm2620_vm5 = vcmp.lt.f32.partialorder %v2578_v38, 0.0 }
 0xe08   : > { %v2583_v41 = vmul.f32 0.3275911, %v2581_v39  ;;  %v2609_v45 = vsub.f32 0.0, %v2581_v39 }
 0xe09   : > { %v2582_v42 = vmul.f32 0.3275911, %v2580_v40  ;;  %v2608_v46 = vsub.f32 0.0, %v2580_v40 }
 0xe0a   : > { %v2585_v43 = vadd.f32 1.0, %v2583_v41  ;;  %v2611_v48 = vmul.f32 %v2609_v45, %v2581_v39 }
 0xe0b   : > { %v2584_v44 = vadd.f32 1.0, %v2582_v42  ;;  %v2610_v50 = vmul.f32 %v2608_v46, %v2580_v40 }
 0xe0c   : > { %3401 = vrcp.f32 %v2585_v43  ;;  %v2614_v53 = vmul.f32 1.442695, %v2611_v48 }
 0xe0d   : > { %3403 = vrcp.f32 %v2584_v44  ;;  %v2612_v55 = vmul.f32 1.442695, %v2610_v50 }
 0xe0e   : > { %3405 = vpow2.f32 %v2614_v53 }
 0xe0f   : > { %3407 = vpow2.f32 %v2612_v55 }
 0xe16   : > { %v3402_v47 = vpop.eup %3401 }
 0xe17   : > { %v3404_v49 = vpop.eup %3403  ;;  %v2591_v51 = vmul.f32 1.0614054, %v3402_v47 }
 0xe18   : > { %v2590_v9 = vmul.f32 1.0614054, %v3404_v49  ;;  %v3406_v4 = vpop.eup %3405 }
 0xe19   : > { %v2593_v52 = vadd.f32 -1.4531521, %v2591_v51  ;;  %v3408_v6 = vpop.eup %3407 }
 0xe1a   : > { %v2592_v7 = vadd.f32 -1.4531521, %v2590_v9 }
 0xe1b   : > { %v2595_v54 = vmul.f32 %v3402_v47, %v2593_v52 }
 0xe1c   : > { %v2594_v56 = vmul.f32 %v3404_v49, %v2592_v7  ;;  %v3041_v7 = vld [vmem:[%s649_s26] ss:$0 sm:$0xff]  ;;  %s3991_s26 = scalar_lea.hbm %s4109_s18, %s3052_s15 }
 0xe1d   : > { %v2597_v57 = vadd.f32 1.4214138, %v2595_v54 }
 0xe1e   : > { %v2596_v58 = vadd.f32 1.4214138, %v2594_v56 }
 0xe1f   : > { %v2599_v59 = vmul.f32 %v3402_v47, %v2597_v57  ;;  %v3042_v57 = vld [vmem:[%s652_s1] ss:$0 sm:$0xff]  ;;  %s4110_s1 = sand.u32 1, %s4107_s23  }
 0xe20   : > { %v2598_v60 = vmul.f32 %v3404_v49, %v2596_v58  ;;  %s4003_s28 = scalar_lea.sflag [#allocation5], %s4110_s1 }
 0xe21   : > { %v2601_v61 = vadd.f32 -0.28449672, %v2599_v59 }
 0xe22   : > { %v2600_v62 = vadd.f32 -0.28449672, %v2598_v60 }
 0xe23   : > { %v2603_v63 = vmul.f32 %v3402_v47, %v2601_v61 }
 0xe24   : > { %v2602_v0 = vmul.f32 %v3404_v49, %v2600_v62 }
 0xe25   : > { %v2605_v1 = vadd.f32 0.2548296, %v2603_v63 }
 0xe26   : > { %v2604_v2 = vadd.f32 0.2548296, %v2602_v0 }
 0xe27   : > { %v2607_v3 = vmul.f32 %v3402_v47, %v2605_v1 }
 0xe28   : > { %v2606_v5 = vmul.f32 %v3404_v49, %v2604_v2 }
 0xe29   : > { %v2617_v8 = vmul.f32 %v3406_v4, %v2607_v3 }
 0xe2a   : > { %v2616_v11 = vmul.f32 %v3408_v6, %v2606_v5 }
 0xe2b   : > { %v2619_v12 = vsub.f32 1.0, %v2617_v8 }
 0xe2c   : > { %v2618_v13 = vsub.f32 1.0, %v2616_v11 }
 0xe2d   : > { %v2623_v16 = vsub.f32 0.0, %v2619_v12 }
 0xe2e   : > { %v2622_v17 = vsub.f32 0.0, %v2618_v13 }
 0xe2f   : > { %v2625_v18 = vsel %vm2621_vm4, %v2623_v16, %v2619_v12 }
 0xe30   : > { %v2627_v20 = vadd.f32 1.0, %v2625_v18  ;;  %v2624_v19 = vsel %vm2620_vm5, %v2622_v17, %v2618_v13 }
 0xe31   : > { %v2626_v24 = vadd.f32 1.0, %v2624_v19 }
 0xe32   : > { %v2629_v23 = vmul.f32 %v2627_v20, %v2577_v25 }
 0xe33   : > { %v2628_v26 = vmul.f32 %v2626_v24, %v2576_v22 }
 0xe35   : > { %3257 = vmatprep.mubr.msk.f32.mxu0 %vm2645_vm6, %v2628_v26 }
 0xe36   : > { %3258 = vmatmul.mubr.msk.f32.vlgmr.msra.gmra.mrb[14].mxu0 %vm2645_vm6, %v2629_v23 }
 0xf09   : > { %v3259_v28 = vpop.f32.mrb[14].mxu0 }
 0xf0a   : > { %v2724_v29 = vadd.f32 %v3259_v28, %v3038_v27  ;;  %v2718_v14 = vpop.f32.mrb[15].mxu0 }
 0xf0b   : > { %v2719_v30 = vadd.f32 %v3038_v27, %v2718_v14 }
 0xf0c   : > { %v2728_v31 = vadd.f32 %v2724_v29, %v3946_v10 }
 0xf0d   : > { %v2727_v32 = vadd.f32 %v2719_v30, %v3944_v21 }
 0xf0e   : > { %v2734_v33 = vsel %vm677_vm1, %v2728_v31, 0.0  ;;  %v2740_v34 = vmul.f32 %v2728_v31, %v2728_v31 }
 0xf0f   : > { %2735 = vadd.xlane.f32.xlu1 %v2734_v33  ;;  %v2731_v35 = vsel %vm677_vm1, %v2727_v32, 0.0  ;;  %v2739_v36 = vmul.f32 %v2727_v32, %v2727_v32 }
 0xf10   : > { %2732 = vadd.xlane.f32.xlu0 %v2731_v35  ;;  %v2744_v37 = vsel %vm677_vm1, %v2740_v34, 0.0 }
 0xf11   : > { %v2741_v15 = vsel %vm677_vm1, %v2739_v36, 0.0 }
 0xf13   : > { %2745 = vadd.xlane.f32.xlu1 %v2744_v37 }
 0xf14   : > { %2742 = vadd.xlane.f32.xlu0 %v2741_v15 }
 0xf9c   : > { %v2736_v38 = vpop.xlane.xlu1 %2735 }
 0xf9d   : > { %v2738_v39 = vmul.f32 0.03125, %v2736_v38  ;;  %v2733_v40 = vpop.xlane.xlu0 %2732 }
 0xf9e   : > { %v2737_v10 = vmul.f32 0.03125, %v2733_v40 }
 0xf9f   : > { %v2750_v21 = vmul.f32 %v2738_v39, %v2738_v39  ;;  %v2760_v9 = vsub.f32 %v2728_v31, %v2738_v39 }
 0xfa0   : > { %v2746_v41 = vpop.xlane.xlu1 %2745  ;;  %v2749_v44 = vmul.f32 %v2737_v10, %v2737_v10  ;;  %v2759_v53 = vsub.f32 %v2727_v32, %v2737_v10 }
 0xfa1   : > { %v2748_v42 = vmul.f32 0.03125, %v2746_v41  ;;  %v2743_v43 = vpop.xlane.xlu0 %2742 }
 0xfa2   : > { %v2747_v45 = vmul.f32 0.03125, %v2743_v43 }
 0xfa3   : > { %v2752_v46 = vsub.f32 %v2748_v42, %v2750_v21 }
 0xfa4   : > { %v2751_v47 = vsub.f32 %v2747_v45, %v2749_v44 }
 0xfa5   : > { %v2754_v48 = vmax.f32 %v2752_v46, 0.0 }
 0xfa6   : > { %v2753_v49 = vmax.f32 %v2751_v47, 0.0 }
 0xfa7   : > { %v2756_v51 = vadd.f32 1e-12, %v2754_v48 }
 0xfa8   : > { %v2755_v50 = vadd.f32 1e-12, %v2753_v49 }
 0xfa9   : > { %3409 = vrsqrt.f32 %v2756_v51 }
 0xfaa   : > { %3411 = vrsqrt.f32 %v2755_v50 }
 0xfb3   : > { %v3410_v52 = vpop.eup %3409 }
 0xfb4   : > { %v3412_v54 = vpop.eup %3411  ;;  %v2762_v55 = vmul.f32 %v3410_v52, %v2760_v9 }
 0xfb5   : > { %v2761_v56 = vmul.f32 %v3412_v54, %v2759_v53 }
 0xfb6   : > { %v2770_v58 = vmul.f32 %v3041_v7, %v2762_v55 }
 0xfb7   : > { %v2769_v59 = vmul.f32 %v3041_v7, %v2761_v56 }
 0xfb8   : > { %v2778_v60 = vadd.f32 %v3042_v57, %v2770_v58 }
 0xfb9   : > { %v2777_v61 = vadd.f32 %v3042_v57, %v2769_v59 }
 0xfba   : > { %2780 = vst.msk [vmem:[#allocation2 + $0x8] sm:$0xff] %vm677_vm1, %v2778_v60  ;;  %2782 = vst.msk [vmem:[%s3746_s19 + $0x8] sm:$0xff] %vm677_vm1, %v2778_v60 }
 0xfbb   : > { %2779 = vst.msk [vmem:[#allocation2] sm:$0xff] %vm677_vm1, %v2777_v61  ;;  %2781 = vst.msk [vmem:[%s3746_s19] sm:$0xff] %vm677_vm1, %v2777_v61 }
 0xfbc   : > { %3454 = shalt.err (!%p3451_p8)
}
 0xfbd   : > { %s3455_s19 = scalar_lea.hbm %s3991_s26, 256  ;;  %s3459_s30 = scalar_lea.hbm %s4109_s18, 512 }
 0xfbe   : > { %p3456_p12 = scmp.ne.s32.totalorder %s3991_s26, %s3455_s19  ;;  %p3460_p1 = scmp.lt.u32.totalorder %s3991_s26, %s4109_s18 }
 0xfbf   : > { %p3461_p5 = scmp.lt.u32.totalorder %s3459_s30, %s3455_s19  ;;  %p3463_p9 = scmp.lt.u32.totalorder %s3455_s19, %s3991_s26 }
 0xfc0   : > { %p3457_p0 = pnand %p3456_p12, %p4111_p10 }
 0xfc1   : > { %p3462_p6 = por %p3461_p5, %p3460_p1 }
 0xfc2   : > { %p3458_p2 = pneg %p3457_p0 }
 0xfc3   : > { %p3464_p11 = por %p3463_p9, %p3462_p6 }
 0xfc5   : > { %p3465_p13 = pnand %p3464_p11, %p3458_p2 }
 0xfc7   : > { %3468 = shalt.err (!%p3465_p13)
}
 0xfc8   : > { %s3526_s0 = smov 128   ;;  %s3527_s15 = smov 8  }
 0xfc9   : > { %3302 = dma.vmem_to_hbm [thread:$0]  (%p4111_p10), %s3993_s20, 256, %s3991_s26, %s4003_s28, %s3526_s0, %s3526_s0, %s3527_s15  }
 0xfca PF: > { %s4112_s4 = sld [smem:[#allocation12_spill]]  ;;  %s4113_s24 = sld [smem:[#allocation9_spill]] }
 0xfcb   : > { %s4114_s1 = sld [smem:[#allocation17_spill]] }
 0xfd0   : > { %p3314_p3 = scmp.ge.s32.totalorder %s4112_s4, 2  ;;  %s2812_s21 = sand.u32 1, %s4113_s24  }
 0xfd1   : > { %p4115_p4 = scmp.ne.s32.totalorder %s4114_s1, 0  ;;  %s2813_s29 = scalar_lea.sflag [#allocation5], %s2812_s21 }
 0xfd3   : > { %p3309_p7 = pnand %p3314_p3, %p4115_p4 }
 0xfd5   : > { %3490 = dma.done.wait (!%p3309_p7), %s2813_s29, 256  }
 0xfd6   : > { %3492 = vsyncadd (!%p3309_p7), %s2813_s29, 4294967040  ;;  %s4116_s16 = sld [smem:[#allocation14_spill]]  ;;  %s4117_s29 = sld [smem:[#allocation10_spill]] }
 0xfd7   : > { %s4118_s30 = sld [smem:[#allocation11_spill]]  ;;  %s4119_s15 = sld [smem:[#allocation15_spill]] }
 0xfdc   : > { %p25_p8 = scmp.ge.s32.totalorder %s4116_s16, 4  }
 0xfde   :  { %27 = sbr.rel (!%p25_p8) target bundleno = 10 (0xa), region = 153 }
 0xfe5   :  { %2818 = vsyncpa [#allocation4], 1 }
 0xfe6   :  { %2820 = vsyncpa [#allocation4 + $0x1], 1 }
 0xfe7   :  { %2821 = vsyncpa [#allocation5], 1 }
 0xfe8   :  { %2823 = vsyncpa [#allocation5 + $0x1], 1 }

</bundles_post_ra>
